<compile_context>
chip_gen: v7x
topology: tpu7x:2x2x1
jax: 0.10.0
libtpu: 0.0.40
codegen_flags: <defaults>
</compile_context>

<pallas_src>
import functools

import jax
import jax.numpy as jnp
from jax import lax
from jax.experimental import pallas as pl
from jax.experimental.pallas import tpu as pltpu


def _act_kernel(x_ref, w_ref, b_ref, out_ref, ponder_ref, coeff_ref, *,
                max_steps, threshold, chunk):
    w = w_ref[...].astype(jnp.float32)      # (1, D): sublane-broadcast vs each chunk
    b = b_ref[0]                            # scalar f32 from SMEM

    rt = out_ref.shape[0]
    n_chunks = rt // chunk                  # static; wrapper guarantees rt % chunk == 0

    # Boolean identity used for the sublane<->lane relayouts (built once per grid
    # step).  Using jnp.where with it keeps non-finite garbage from OOB rows of a
    # ragged last block confined to its own lane/row.
    ident = (lax.broadcasted_iota(jnp.int32, (chunk, chunk), 0) ==
             lax.broadcasted_iota(jnp.int32, (chunk, chunk), 1))

    # ---- pass 1: per-row halting recurrence, lane-dense carries ---------------
    @pl.loop(0, n_chunks)
    def _pass1(c):
        r0 = pl.multiple_of(c * chunk, chunk)
        x_c = x_ref[pl.ds(r0, chunk), :].astype(jnp.float32)          # (chunk, D)

        # halting logits: VPU multiply + lane reduce (exact f32; MXU stays idle).
        logits_col = jnp.sum(x_c * w, axis=-1, keepdims=True) + b     # (chunk, 1)

        # relayout (chunk,1) -> (1,chunk): per-row scalars become lane-dense so
        # the unrolled 20-step loop carries 1 vreg per quantity.
        logits_row = jnp.sum(jnp.where(ident, logits_col, 0.0),
                             axis=0, keepdims=True)                   # (1, chunk)
        p = jax.nn.sigmoid(logits_row)

        z = jnp.zeros((1, chunk), jnp.float32)

        def body(_, carry):
            halt, rem, nup, coeff = carry
            still = (halt < 1.0).astype(jnp.float32)
            p_still = p * still
            new_halted = ((halt + p_still) > threshold).astype(jnp.float32) * still
            halt = halt + p_still
            rem = rem + new_halted * (1.0 - halt)
            halt = halt + new_halted * rem
            uw = p_still + new_halted * rem
            coeff = (1.0 - uw) * coeff + uw      # previous_state == coeff * x
            nup = nup + still
            return (halt, rem, nup, coeff)

        # TODO(synk): the torch early `break` is omitted; once no row is still
        # running every remaining iteration is an exact no-op, so it is equivalent.
        halt, rem, nup, coeff = lax.fori_loop(0, max_steps, body, (z, z, z, z),
                                              unroll=True)

        # relayout back (1,chunk) -> (chunk,1) for per-row broadcast / store.
        coeff_col = jnp.sum(jnp.where(ident, coeff, 0.0), axis=1, keepdims=True)
        ponder_col = jnp.sum(jnp.where(ident, nup + rem, 0.0), axis=1, keepdims=True)

        coeff_ref[pl.ds(r0, chunk), :] = coeff_col
        ponder_ref[pl.ds(r0, chunk), :] = ponder_col.astype(ponder_ref.dtype)

    # ---- pass 2: state = coeff * x (x re-read from the VMEM block, never held
    # live across the unrolled loop) --------------------------------------------
    @pl.loop(0, n_chunks)
    def _pass2(c):
        r0 = pl.multiple_of(c * chunk, chunk)
        out_ref[pl.ds(r0, chunk), :] = (
            coeff_ref[pl.ds(r0, chunk), :] *
            x_ref[pl.ds(r0, chunk), :].astype(jnp.float32)
        ).astype(out_ref.dtype)


def _cdiv(a, b):
    return -(-a // b)


def _round_up(n, m):
    return ((n + m - 1) // m) * m


def _vmem_budget_and_limit():
    """Generation-aware VMEM budget/limit (bytes): ~96/110 MiB on 128-MiB parts
    (v4/v5/v6), conservative 40/48 MiB otherwise (v7x has 64 MiB per TC)."""
    big = False
    try:
        kind = jax.devices()[0].device_kind.lower()
        big = any(t in kind for t in ("v4", "v5", "v6"))
    except Exception:
        big = False
    if not big:
        try:
            big = int(pltpu.get_tpu_info().vmem_capacity_bytes) >= (100 << 20)
        except Exception:
            big = False
    if big:
        return 96 << 20, 110 << 20
    return 40 << 20, 48 << 20


def adaptive_computation_time(x, weight, bias, *, max_steps=20, threshold=0.99):
    """x: (B, S, D); weight: (1, D); bias: (1,). Returns (state, ponder_time)."""
    B, S, D = x.shape
    rows = B * S

    x2 = x.reshape(rows, D)                        # metadata-only reshape, no copy
    w2 = weight.reshape(1, D).astype(jnp.float32)
    b1 = bias.reshape(1).astype(jnp.float32)

    vmem_budget, vmem_limit = _vmem_budget_and_limit()

    # ---- row-tile / chunk selection -------------------------------------------
    if rows <= 128:
        chunk = rows                               # single tiny block
        rt = rows
    else:
        chunk = 128                                # 1 vreg per lane-dense carry
        # Biggest tile whose double-buffered f32 in+out blocks stay under budget.
        rt_cap = max(chunk, (vmem_budget // (4 * D * 4)) // chunk * chunk)
        rt = min(4096, rt_cap, _round_up(rows, chunk))
        # v7x megacore + DMA/compute overlap want at least 2 grid steps.
        if _cdiv(rows, rt) == 1 and rows > chunk:
            rt = max(chunk, _round_up(_cdiv(rows, 2), chunk))
    nblk = _cdiv(rows, rt)                         # ragged last block handled by Pallas

    kernel = functools.partial(_act_kernel, max_steps=max_steps,
                               threshold=threshold, chunk=chunk)

    out2, ponder2 = pl.pallas_call(
        kernel,
        out_shape=(
            jax.ShapeDtypeStruct((rows, D), x.dtype),
            jax.ShapeDtypeStruct((rows, 1), jnp.float32),
        ),
        grid_spec=pltpu.PrefetchScalarGridSpec(
            num_scalar_prefetch=0,
            grid=(nblk,),
            in_specs=[
                pl.BlockSpec((rt, D), lambda i: (i, 0)),             # x row tile
                pl.BlockSpec((1, D), lambda i: (0, 0)),              # halting weight
                pl.BlockSpec(memory_space=pltpu.MemorySpace.SMEM),   # bias scalar
            ],
            out_specs=[
                pl.BlockSpec((rt, D), lambda i: (i, 0)),             # state
                pl.BlockSpec((rt, 1), lambda i: (i, 0)),             # ponder_time
            ],
            scratch_shapes=[pltpu.VMEM((rt, 1), jnp.float32)],       # coeff per row
        ),
        compiler_params=pltpu.CompilerParams(
            dimension_semantics=("parallel",),
            vmem_limit_bytes=vmem_limit,
        ),
    )(x2, w2, b1)

    return out2.reshape(B, S, D), ponder2.reshape(B, S, 1)


def _reference(x, weight, bias, max_steps=20, threshold=0.99):
    """Plain-JAX mirror of the PyTorch forward for verification."""
    B, S, D = x.shape
    logits = jnp.einsum("bsd,d->bs", x, weight[0],
                        precision=lax.Precision.HIGHEST) + bias[0]
    p = jax.nn.sigmoid(logits)[..., None]
    halt = jnp.zeros((B, S, 1), jnp.float32)
    rem = jnp.zeros((B, S, 1), jnp.float32)
    nup = jnp.zeros((B, S, 1), jnp.float32)
    prev = jnp.zeros_like(x)
    for _ in range(max_steps):
        still = (halt < 1.0).astype(jnp.float32)
        new_halted = ((halt + p * still) > threshold).astype(jnp.float32) * still
        halt = halt + p * still
        rem = rem + new_halted * (1.0 - halt)
        halt = halt + new_halted * rem
        uw = p * still + new_halted * rem
        prev = (1.0 - uw) * prev + uw * x
        nup = nup + still
    return prev, nup + rem


def _check(B, S, D, key, max_steps=20, threshold=0.99):
    kx, kw, kb = jax.random.split(key, 3)
    x = jax.random.normal(kx, (B, S, D), dtype=jnp.float32)
    # deterministic nn.Linear(d_model, 1)-style init: U(-1/sqrt(D), 1/sqrt(D))
    bound = 1.0 / (D ** 0.5)
    weight = jax.random.uniform(kw, (1, D), jnp.float32, -bound, bound)
    bias = jax.random.uniform(kb, (1,), jnp.float32, -bound, bound)

    state, ponder = adaptive_computation_time(
        x, weight, bias, max_steps=max_steps, threshold=threshold)
    jax.block_until_ready((state, ponder))

    ref_state, ref_ponder = _reference(x, weight, bias, max_steps, threshold)
    assert state.shape == (B, S, D) and ponder.shape == (B, S, 1)
    assert jnp.allclose(state, ref_state, atol=1e-5, rtol=1e-5)
    assert jnp.allclose(ponder, ref_ponder, atol=1e-5, rtol=1e-5)


if __name__ == "__main__":
    key = jax.random.PRNGKey(0)
    k1, k2 = jax.random.split(key)
    # small shape implied by the module: batch=2, seq=8, d_model=32
    _check(2, 8, 32, k1)
    # multi-block grid with a ragged last row tile (rows=200, tile=128)
    _check(2, 100, 64, k2)
    print("KERNEL_OK")
</pallas_src>

<mosaic_0001>
module attributes {stable_mosaic.version = 11 : i64} {
  func.func @_act_kernel(%arg0: i32, %arg1: memref<16x32xf32, #tpu.memory_space<vmem>>, %arg2: memref<1x32xf32, #tpu.memory_space<vmem>>, %arg3: memref<1xf32, #tpu.memory_space<smem>>, %arg4: memref<16x32xf32, #tpu.memory_space<vmem>>, %arg5: memref<16x1xf32, #tpu.memory_space<vmem>>, %arg6: memref<16x1xf32, #tpu.memory_space<vmem>>) attributes {dimension_semantics = [#tpu.dimension_semantics<parallel>], iteration_bounds = array<i64: 1>, scalar_prefetch = 0 : i64, scratch_operands = 1 : i64, tpu.core_type = #tpu.core_type<tc>, window_params = [{transform_indices = @transform_0, window_bounds = array<i64: 16, 32>}, {pipeline_mode = #tpu.pipeline_mode<synchronous>, transform_indices = @transform_1, window_bounds = array<i64: 1, 32>}, {transform_indices = @transform_2, window_bounds = array<i64: 1>}, {transform_indices = @transform_3, window_bounds = array<i64: 16, 32>}, {transform_indices = @transform_4, window_bounds = array<i64: 16, 1>}]} {
    %c0 = arith.constant 0 : index
    %c0_0 = arith.constant 0 : index
    %0 = vector.load %arg2[%c0, %c0_0] : memref<1x32xf32, #tpu.memory_space<vmem>>, vector<1x32xf32>
    %c0_1 = arith.constant 0 : index
    %1 = memref.load %arg3[%c0_1] : memref<1xf32, #tpu.memory_space<smem>>
    %2 = tpu.iota {dimensions = array<i32: 0>} : vector<16x16xi32>
    %3 = tpu.iota {dimensions = array<i32: 1>} : vector<16x16xi32>
    %4 = arith.cmpi eq, %2, %3 : vector<16x16xi32>
    %c0_i32 = arith.constant 0 : i32
    %c1_i32 = arith.constant 1 : i32
    %5 = arith.muli %c0_i32, %c1_i32 : i32
    %c0_i32_2 = arith.constant 0 : i32
    %6 = arith.addi %c0_i32_2, %5 : i32
    %c16_i32 = arith.constant 16 : i32
    %7 = arith.muli %6, %c16_i32 : i32
    %8 = tpu.assume_multiple %7, 16 : i32
    %9 = arith.index_cast %8 : i32 to index
    %c0_3 = arith.constant 0 : index
    %10 = vector.load %arg1[%9, %c0_3] : memref<16x32xf32, #tpu.memory_space<vmem>>, vector<16x32xf32>
    %11 = vector.broadcast %0 : vector<1x32xf32> to vector<16x32xf32>
    %12 = arith.mulf %10, %11 : vector<16x32xf32>
    %cst = arith.constant dense<0.000000e+00> : vector<16xf32>
    %13 = vector.multi_reduction <add>, %12, %cst [1] : vector<16x32xf32> to vector<16xf32>
    %14 = vector.shape_cast %13 : vector<16xf32> to vector<16x1xf32>
    %15 = vector.broadcast %1 : f32 to vector<16x1xf32>
    %16 = arith.addf %14, %15 : vector<16x1xf32>
    %cst_4 = arith.constant 0.000000e+00 : f32
    %17 = vector.shape_cast %16 : vector<16x1xf32> to vector<16x1xf32>
    %18 = vector.broadcast %17 : vector<16x1xf32> to vector<16x16xf32>
    %19 = vector.broadcast %cst_4 : f32 to vector<16x16xf32>
    %20 = arith.select %4, %18, %19 : vector<16x16xi1>, vector<16x16xf32>
    %cst_5 = arith.constant dense<0.000000e+00> : vector<16xf32>
    %21 = vector.multi_reduction <add>, %20, %cst_5 [0] : vector<16x16xf32> to vector<16xf32>
    %22 = vector.shape_cast %21 : vector<16xf32> to vector<1x16xf32>
    %23 = arith.negf %22 : vector<1x16xf32>
    %24 = math.exp %23 : vector<1x16xf32>
    %cst_6 = arith.constant 1.000000e+00 : f32
    %25 = vector.broadcast %cst_6 : f32 to vector<1x16xf32>
    %26 = arith.addf %25, %24 : vector<1x16xf32>
    %27 = arith.divf %25, %26 : vector<1x16xf32>
    %cst_7 = arith.constant 0.000000e+00 : f32
    %28 = vector.broadcast %cst_7 : f32 to vector<1x16xf32>
    %c0_i32_8 = arith.constant 0 : i32
    %cst_9 = arith.constant 1.000000e+00 : f32
    %29 = vector.broadcast %cst_9 : f32 to vector<1x16xf32>
    %30 = arith.cmpf olt, %28, %29 : vector<1x16xf32>
    %31 = arith.extui %30 : vector<1x16xi1> to vector<1x16xi32>
    %32 = arith.sitofp %31 : vector<1x16xi32> to vector<1x16xf32>
    %33 = arith.mulf %27, %32 : vector<1x16xf32>
    %34 = arith.addf %28, %33 : vector<1x16xf32>
    %cst_10 = arith.constant 9.900000e-01 : f32
    %35 = vector.broadcast %cst_10 : f32 to vector<1x16xf32>
    %36 = arith.cmpf ogt, %34, %35 : vector<1x16xf32>
    %37 = arith.extui %36 : vector<1x16xi1> to vector<1x16xi32>
    %38 = arith.sitofp %37 : vector<1x16xi32> to vector<1x16xf32>
    %39 = arith.mulf %38, %32 : vector<1x16xf32>
    %40 = arith.addf %28, %33 : vector<1x16xf32>
    %cst_11 = arith.constant 1.000000e+00 : f32
    %41 = vector.broadcast %cst_11 : f32 to vector<1x16xf32>
    %42 = arith.subf %41, %40 : vector<1x16xf32>
    %43 = arith.mulf %39, %42 : vector<1x16xf32>
    %44 = arith.addf %28, %43 : vector<1x16xf32>
    %45 = arith.mulf %39, %44 : vector<1x16xf32>
    %46 = arith.addf %40, %45 : vector<1x16xf32>
    %47 = arith.mulf %39, %44 : vector<1x16xf32>
    %48 = arith.addf %33, %47 : vector<1x16xf32>
    %cst_12 = arith.constant 1.000000e+00 : f32
    %49 = vector.broadcast %cst_12 : f32 to vector<1x16xf32>
    %50 = arith.subf %49, %48 : vector<1x16xf32>
    %51 = arith.mulf %50, %28 : vector<1x16xf32>
    %52 = arith.addf %51, %48 : vector<1x16xf32>
    %53 = arith.addf %28, %32 : vector<1x16xf32>
    %c1_i32_13 = arith.constant 1 : i32
    %cst_14 = arith.constant 1.000000e+00 : f32
    %54 = vector.broadcast %cst_14 : f32 to vector<1x16xf32>
    %55 = arith.cmpf olt, %46, %54 : vector<1x16xf32>
    %56 = arith.extui %55 : vector<1x16xi1> to vector<1x16xi32>
    %57 = arith.sitofp %56 : vector<1x16xi32> to vector<1x16xf32>
    %58 = arith.mulf %27, %57 : vector<1x16xf32>
    %59 = arith.addf %46, %58 : vector<1x16xf32>
    %cst_15 = arith.constant 9.900000e-01 : f32
    %60 = vector.broadcast %cst_15 : f32 to vector<1x16xf32>
    %61 = arith.cmpf ogt, %59, %60 : vector<1x16xf32>
    %62 = arith.extui %61 : vector<1x16xi1> to vector<1x16xi32>
    %63 = arith.sitofp %62 : vector<1x16xi32> to vector<1x16xf32>
    %64 = arith.mulf %63, %57 : vector<1x16xf32>
    %65 = arith.addf %46, %58 : vector<1x16xf32>
    %cst_16 = arith.constant 1.000000e+00 : f32
    %66 = vector.broadcast %cst_16 : f32 to vector<1x16xf32>
    %67 = arith.subf %66, %65 : vector<1x16xf32>
    %68 = arith.mulf %64, %67 : vector<1x16xf32>
    %69 = arith.addf %44, %68 : vector<1x16xf32>
    %70 = arith.mulf %64, %69 : vector<1x16xf32>
    %71 = arith.addf %65, %70 : vector<1x16xf32>
    %72 = arith.mulf %64, %69 : vector<1x16xf32>
    %73 = arith.addf %58, %72 : vector<1x16xf32>
    %cst_17 = arith.constant 1.000000e+00 : f32
    %74 = vector.broadcast %cst_17 : f32 to vector<1x16xf32>
    %75 = arith.subf %74, %73 : vector<1x16xf32>
    %76 = arith.mulf %75, %52 : vector<1x16xf32>
    %77 = arith.addf %76, %73 : vector<1x16xf32>
    %78 = arith.addf %53, %57 : vector<1x16xf32>
    %c2_i32 = arith.constant 2 : i32
    %cst_18 = arith.constant 1.000000e+00 : f32
    %79 = vector.broadcast %cst_18 : f32 to vector<1x16xf32>
    %80 = arith.cmpf olt, %71, %79 : vector<1x16xf32>
    %81 = arith.extui %80 : vector<1x16xi1> to vector<1x16xi32>
    %82 = arith.sitofp %81 : vector<1x16xi32> to vector<1x16xf32>
    %83 = arith.mulf %27, %82 : vector<1x16xf32>
    %84 = arith.addf %71, %83 : vector<1x16xf32>
    %cst_19 = arith.constant 9.900000e-01 : f32
    %85 = vector.broadcast %cst_19 : f32 to vector<1x16xf32>
    %86 = arith.cmpf ogt, %84, %85 : vector<1x16xf32>
    %87 = arith.extui %86 : vector<1x16xi1> to vector<1x16xi32>
    %88 = arith.sitofp %87 : vector<1x16xi32> to vector<1x16xf32>
    %89 = arith.mulf %88, %82 : vector<1x16xf32>
    %90 = arith.addf %71, %83 : vector<1x16xf32>
    %cst_20 = arith.constant 1.000000e+00 : f32
    %91 = vector.broadcast %cst_20 : f32 to vector<1x16xf32>
    %92 = arith.subf %91, %90 : vector<1x16xf32>
    %93 = arith.mulf %89, %92 : vector<1x16xf32>
    %94 = arith.addf %69, %93 : vector<1x16xf32>
    %95 = arith.mulf %89, %94 : vector<1x16xf32>
    %96 = arith.addf %90, %95 : vector<1x16xf32>
    %97 = arith.mulf %89, %94 : vector<1x16xf32>
    %98 = arith.addf %83, %97 : vector<1x16xf32>
    %cst_21 = arith.constant 1.000000e+00 : f32
    %99 = vector.broadcast %cst_21 : f32 to vector<1x16xf32>
    %100 = arith.subf %99, %98 : vector<1x16xf32>
    %101 = arith.mulf %100, %77 : vector<1x16xf32>
    %102 = arith.addf %101, %98 : vector<1x16xf32>
    %103 = arith.addf %78, %82 : vector<1x16xf32>
    %c3_i32 = arith.constant 3 : i32
    %cst_22 = arith.constant 1.000000e+00 : f32
    %104 = vector.broadcast %cst_22 : f32 to vector<1x16xf32>
    %105 = arith.cmpf olt, %96, %104 : vector<1x16xf32>
    %106 = arith.extui %105 : vector<1x16xi1> to vector<1x16xi32>
    %107 = arith.sitofp %106 : vector<1x16xi32> to vector<1x16xf32>
    %108 = arith.mulf %27, %107 : vector<1x16xf32>
    %109 = arith.addf %96, %108 : vector<1x16xf32>
    %cst_23 = arith.constant 9.900000e-01 : f32
    %110 = vector.broadcast %cst_23 : f32 to vector<1x16xf32>
    %111 = arith.cmpf ogt, %109, %110 : vector<1x16xf32>
    %112 = arith.extui %111 : vector<1x16xi1> to vector<1x16xi32>
    %113 = arith.sitofp %112 : vector<1x16xi32> to vector<1x16xf32>
    %114 = arith.mulf %113, %107 : vector<1x16xf32>
    %115 = arith.addf %96, %108 : vector<1x16xf32>
    %cst_24 = arith.constant 1.000000e+00 : f32
    %116 = vector.broadcast %cst_24 : f32 to vector<1x16xf32>
    %117 = arith.subf %116, %115 : vector<1x16xf32>
    %118 = arith.mulf %114, %117 : vector<1x16xf32>
    %119 = arith.addf %94, %118 : vector<1x16xf32>
    %120 = arith.mulf %114, %119 : vector<1x16xf32>
    %121 = arith.addf %115, %120 : vector<1x16xf32>
    %122 = arith.mulf %114, %119 : vector<1x16xf32>
    %123 = arith.addf %108, %122 : vector<1x16xf32>
    %cst_25 = arith.constant 1.000000e+00 : f32
    %124 = vector.broadcast %cst_25 : f32 to vector<1x16xf32>
    %125 = arith.subf %124, %123 : vector<1x16xf32>
    %126 = arith.mulf %125, %102 : vector<1x16xf32>
    %127 = arith.addf %126, %123 : vector<1x16xf32>
    %128 = arith.addf %103, %107 : vector<1x16xf32>
    %c4_i32 = arith.constant 4 : i32
    %cst_26 = arith.constant 1.000000e+00 : f32
    %129 = vector.broadcast %cst_26 : f32 to vector<1x16xf32>
    %130 = arith.cmpf olt, %121, %129 : vector<1x16xf32>
    %131 = arith.extui %130 : vector<1x16xi1> to vector<1x16xi32>
    %132 = arith.sitofp %131 : vector<1x16xi32> to vector<1x16xf32>
    %133 = arith.mulf %27, %132 : vector<1x16xf32>
    %134 = arith.addf %121, %133 : vector<1x16xf32>
    %cst_27 = arith.constant 9.900000e-01 : f32
    %135 = vector.broadcast %cst_27 : f32 to vector<1x16xf32>
    %136 = arith.cmpf ogt, %134, %135 : vector<1x16xf32>
    %137 = arith.extui %136 : vector<1x16xi1> to vector<1x16xi32>
    %138 = arith.sitofp %137 : vector<1x16xi32> to vector<1x16xf32>
    %139 = arith.mulf %138, %132 : vector<1x16xf32>
    %140 = arith.addf %121, %133 : vector<1x16xf32>
    %cst_28 = arith.constant 1.000000e+00 : f32
    %141 = vector.broadcast %cst_28 : f32 to vector<1x16xf32>
    %142 = arith.subf %141, %140 : vector<1x16xf32>
    %143 = arith.mulf %139, %142 : vector<1x16xf32>
    %144 = arith.addf %119, %143 : vector<1x16xf32>
    %145 = arith.mulf %139, %144 : vector<1x16xf32>
    %146 = arith.addf %140, %145 : vector<1x16xf32>
    %147 = arith.mulf %139, %144 : vector<1x16xf32>
    %148 = arith.addf %133, %147 : vector<1x16xf32>
    %cst_29 = arith.constant 1.000000e+00 : f32
    %149 = vector.broadcast %cst_29 : f32 to vector<1x16xf32>
    %150 = arith.subf %149, %148 : vector<1x16xf32>
    %151 = arith.mulf %150, %127 : vector<1x16xf32>
    %152 = arith.addf %151, %148 : vector<1x16xf32>
    %153 = arith.addf %128, %132 : vector<1x16xf32>
    %c5_i32 = arith.constant 5 : i32
    %cst_30 = arith.constant 1.000000e+00 : f32
    %154 = vector.broadcast %cst_30 : f32 to vector<1x16xf32>
    %155 = arith.cmpf olt, %146, %154 : vector<1x16xf32>
    %156 = arith.extui %155 : vector<1x16xi1> to vector<1x16xi32>
    %157 = arith.sitofp %156 : vector<1x16xi32> to vector<1x16xf32>
    %158 = arith.mulf %27, %157 : vector<1x16xf32>
    %159 = arith.addf %146, %158 : vector<1x16xf32>
    %cst_31 = arith.constant 9.900000e-01 : f32
    %160 = vector.broadcast %cst_31 : f32 to vector<1x16xf32>
    %161 = arith.cmpf ogt, %159, %160 : vector<1x16xf32>
    %162 = arith.extui %161 : vector<1x16xi1> to vector<1x16xi32>
    %163 = arith.sitofp %162 : vector<1x16xi32> to vector<1x16xf32>
    %164 = arith.mulf %163, %157 : vector<1x16xf32>
    %165 = arith.addf %146, %158 : vector<1x16xf32>
    %cst_32 = arith.constant 1.000000e+00 : f32
    %166 = vector.broadcast %cst_32 : f32 to vector<1x16xf32>
    %167 = arith.subf %166, %165 : vector<1x16xf32>
    %168 = arith.mulf %164, %167 : vector<1x16xf32>
    %169 = arith.addf %144, %168 : vector<1x16xf32>
    %170 = arith.mulf %164, %169 : vector<1x16xf32>
    %171 = arith.addf %165, %170 : vector<1x16xf32>
    %172 = arith.mulf %164, %169 : vector<1x16xf32>
    %173 = arith.addf %158, %172 : vector<1x16xf32>
    %cst_33 = arith.constant 1.000000e+00 : f32
    %174 = vector.broadcast %cst_33 : f32 to vector<1x16xf32>
    %175 = arith.subf %174, %173 : vector<1x16xf32>
    %176 = arith.mulf %175, %152 : vector<1x16xf32>
    %177 = arith.addf %176, %173 : vector<1x16xf32>
    %178 = arith.addf %153, %157 : vector<1x16xf32>
    %c6_i32 = arith.constant 6 : i32
    %cst_34 = arith.constant 1.000000e+00 : f32
    %179 = vector.broadcast %cst_34 : f32 to vector<1x16xf32>
    %180 = arith.cmpf olt, %171, %179 : vector<1x16xf32>
    %181 = arith.extui %180 : vector<1x16xi1> to vector<1x16xi32>
    %182 = arith.sitofp %181 : vector<1x16xi32> to vector<1x16xf32>
    %183 = arith.mulf %27, %182 : vector<1x16xf32>
    %184 = arith.addf %171, %183 : vector<1x16xf32>
    %cst_35 = arith.constant 9.900000e-01 : f32
    %185 = vector.broadcast %cst_35 : f32 to vector<1x16xf32>
    %186 = arith.cmpf ogt, %184, %185 : vector<1x16xf32>
    %187 = arith.extui %186 : vector<1x16xi1> to vector<1x16xi32>
    %188 = arith.sitofp %187 : vector<1x16xi32> to vector<1x16xf32>
    %189 = arith.mulf %188, %182 : vector<1x16xf32>
    %190 = arith.addf %171, %183 : vector<1x16xf32>
    %cst_36 = arith.constant 1.000000e+00 : f32
    %191 = vector.broadcast %cst_36 : f32 to vector<1x16xf32>
    %192 = arith.subf %191, %190 : vector<1x16xf32>
    %193 = arith.mulf %189, %192 : vector<1x16xf32>
    %194 = arith.addf %169, %193 : vector<1x16xf32>
    %195 = arith.mulf %189, %194 : vector<1x16xf32>
    %196 = arith.addf %190, %195 : vector<1x16xf32>
    %197 = arith.mulf %189, %194 : vector<1x16xf32>
    %198 = arith.addf %183, %197 : vector<1x16xf32>
    %cst_37 = arith.constant 1.000000e+00 : f32
    %199 = vector.broadcast %cst_37 : f32 to vector<1x16xf32>
    %200 = arith.subf %199, %198 : vector<1x16xf32>
    %201 = arith.mulf %200, %177 : vector<1x16xf32>
    %202 = arith.addf %201, %198 : vector<1x16xf32>
    %203 = arith.addf %178, %182 : vector<1x16xf32>
    %c7_i32 = arith.constant 7 : i32
    %cst_38 = arith.constant 1.000000e+00 : f32
    %204 = vector.broadcast %cst_38 : f32 to vector<1x16xf32>
    %205 = arith.cmpf olt, %196, %204 : vector<1x16xf32>
    %206 = arith.extui %205 : vector<1x16xi1> to vector<1x16xi32>
    %207 = arith.sitofp %206 : vector<1x16xi32> to vector<1x16xf32>
    %208 = arith.mulf %27, %207 : vector<1x16xf32>
    %209 = arith.addf %196, %208 : vector<1x16xf32>
    %cst_39 = arith.constant 9.900000e-01 : f32
    %210 = vector.broadcast %cst_39 : f32 to vector<1x16xf32>
    %211 = arith.cmpf ogt, %209, %210 : vector<1x16xf32>
    %212 = arith.extui %211 : vector<1x16xi1> to vector<1x16xi32>
    %213 = arith.sitofp %212 : vector<1x16xi32> to vector<1x16xf32>
    %214 = arith.mulf %213, %207 : vector<1x16xf32>
    %215 = arith.addf %196, %208 : vector<1x16xf32>
    %cst_40 = arith.constant 1.000000e+00 : f32
    %216 = vector.broadcast %cst_40 : f32 to vector<1x16xf32>
    %217 = arith.subf %216, %215 : vector<1x16xf32>
    %218 = arith.mulf %214, %217 : vector<1x16xf32>
    %219 = arith.addf %194, %218 : vector<1x16xf32>
    %220 = arith.mulf %214, %219 : vector<1x16xf32>
    %221 = arith.addf %215, %220 : vector<1x16xf32>
    %222 = arith.mulf %214, %219 : vector<1x16xf32>
    %223 = arith.addf %208, %222 : vector<1x16xf32>
    %cst_41 = arith.constant 1.000000e+00 : f32
    %224 = vector.broadcast %cst_41 : f32 to vector<1x16xf32>
    %225 = arith.subf %224, %223 : vector<1x16xf32>
    %226 = arith.mulf %225, %202 : vector<1x16xf32>
    %227 = arith.addf %226, %223 : vector<1x16xf32>
    %228 = arith.addf %203, %207 : vector<1x16xf32>
    %c8_i32 = arith.constant 8 : i32
    %cst_42 = arith.constant 1.000000e+00 : f32
    %229 = vector.broadcast %cst_42 : f32 to vector<1x16xf32>
    %230 = arith.cmpf olt, %221, %229 : vector<1x16xf32>
    %231 = arith.extui %230 : vector<1x16xi1> to vector<1x16xi32>
    %232 = arith.sitofp %231 : vector<1x16xi32> to vector<1x16xf32>
    %233 = arith.mulf %27, %232 : vector<1x16xf32>
    %234 = arith.addf %221, %233 : vector<1x16xf32>
    %cst_43 = arith.constant 9.900000e-01 : f32
    %235 = vector.broadcast %cst_43 : f32 to vector<1x16xf32>
    %236 = arith.cmpf ogt, %234, %235 : vector<1x16xf32>
    %237 = arith.extui %236 : vector<1x16xi1> to vector<1x16xi32>
    %238 = arith.sitofp %237 : vector<1x16xi32> to vector<1x16xf32>
    %239 = arith.mulf %238, %232 : vector<1x16xf32>
    %240 = arith.addf %221, %233 : vector<1x16xf32>
    %cst_44 = arith.constant 1.000000e+00 : f32
    %241 = vector.broadcast %cst_44 : f32 to vector<1x16xf32>
    %242 = arith.subf %241, %240 : vector<1x16xf32>
    %243 = arith.mulf %239, %242 : vector<1x16xf32>
    %244 = arith.addf %219, %243 : vector<1x16xf32>
    %245 = arith.mulf %239, %244 : vector<1x16xf32>
    %246 = arith.addf %240, %245 : vector<1x16xf32>
    %247 = arith.mulf %239, %244 : vector<1x16xf32>
    %248 = arith.addf %233, %247 : vector<1x16xf32>
    %cst_45 = arith.constant 1.000000e+00 : f32
    %249 = vector.broadcast %cst_45 : f32 to vector<1x16xf32>
    %250 = arith.subf %249, %248 : vector<1x16xf32>
    %251 = arith.mulf %250, %227 : vector<1x16xf32>
    %252 = arith.addf %251, %248 : vector<1x16xf32>
    %253 = arith.addf %228, %232 : vector<1x16xf32>
    %c9_i32 = arith.constant 9 : i32
    %cst_46 = arith.constant 1.000000e+00 : f32
    %254 = vector.broadcast %cst_46 : f32 to vector<1x16xf32>
    %255 = arith.cmpf olt, %246, %254 : vector<1x16xf32>
    %256 = arith.extui %255 : vector<1x16xi1> to vector<1x16xi32>
    %257 = arith.sitofp %256 : vector<1x16xi32> to vector<1x16xf32>
    %258 = arith.mulf %27, %257 : vector<1x16xf32>
    %259 = arith.addf %246, %258 : vector<1x16xf32>
    %cst_47 = arith.constant 9.900000e-01 : f32
    %260 = vector.broadcast %cst_47 : f32 to vector<1x16xf32>
    %261 = arith.cmpf ogt, %259, %260 : vector<1x16xf32>
    %262 = arith.extui %261 : vector<1x16xi1> to vector<1x16xi32>
    %263 = arith.sitofp %262 : vector<1x16xi32> to vector<1x16xf32>
    %264 = arith.mulf %263, %257 : vector<1x16xf32>
    %265 = arith.addf %246, %258 : vector<1x16xf32>
    %cst_48 = arith.constant 1.000000e+00 : f32
    %266 = vector.broadcast %cst_48 : f32 to vector<1x16xf32>
    %267 = arith.subf %266, %265 : vector<1x16xf32>
    %268 = arith.mulf %264, %267 : vector<1x16xf32>
    %269 = arith.addf %244, %268 : vector<1x16xf32>
    %270 = arith.mulf %264, %269 : vector<1x16xf32>
    %271 = arith.addf %265, %270 : vector<1x16xf32>
    %272 = arith.mulf %264, %269 : vector<1x16xf32>
    %273 = arith.addf %258, %272 : vector<1x16xf32>
    %cst_49 = arith.constant 1.000000e+00 : f32
    %274 = vector.broadcast %cst_49 : f32 to vector<1x16xf32>
    %275 = arith.subf %274, %273 : vector<1x16xf32>
    %276 = arith.mulf %275, %252 : vector<1x16xf32>
    %277 = arith.addf %276, %273 : vector<1x16xf32>
    %278 = arith.addf %253, %257 : vector<1x16xf32>
    %c10_i32 = arith.constant 10 : i32
    %cst_50 = arith.constant 1.000000e+00 : f32
    %279 = vector.broadcast %cst_50 : f32 to vector<1x16xf32>
    %280 = arith.cmpf olt, %271, %279 : vector<1x16xf32>
    %281 = arith.extui %280 : vector<1x16xi1> to vector<1x16xi32>
    %282 = arith.sitofp %281 : vector<1x16xi32> to vector<1x16xf32>
    %283 = arith.mulf %27, %282 : vector<1x16xf32>
    %284 = arith.addf %271, %283 : vector<1x16xf32>
    %cst_51 = arith.constant 9.900000e-01 : f32
    %285 = vector.broadcast %cst_51 : f32 to vector<1x16xf32>
    %286 = arith.cmpf ogt, %284, %285 : vector<1x16xf32>
    %287 = arith.extui %286 : vector<1x16xi1> to vector<1x16xi32>
    %288 = arith.sitofp %287 : vector<1x16xi32> to vector<1x16xf32>
    %289 = arith.mulf %288, %282 : vector<1x16xf32>
    %290 = arith.addf %271, %283 : vector<1x16xf32>
    %cst_52 = arith.constant 1.000000e+00 : f32
    %291 = vector.broadcast %cst_52 : f32 to vector<1x16xf32>
    %292 = arith.subf %291, %290 : vector<1x16xf32>
    %293 = arith.mulf %289, %292 : vector<1x16xf32>
    %294 = arith.addf %269, %293 : vector<1x16xf32>
    %295 = arith.mulf %289, %294 : vector<1x16xf32>
    %296 = arith.addf %290, %295 : vector<1x16xf32>
    %297 = arith.mulf %289, %294 : vector<1x16xf32>
    %298 = arith.addf %283, %297 : vector<1x16xf32>
    %cst_53 = arith.constant 1.000000e+00 : f32
    %299 = vector.broadcast %cst_53 : f32 to vector<1x16xf32>
    %300 = arith.subf %299, %298 : vector<1x16xf32>
    %301 = arith.mulf %300, %277 : vector<1x16xf32>
    %302 = arith.addf %301, %298 : vector<1x16xf32>
    %303 = arith.addf %278, %282 : vector<1x16xf32>
    %c11_i32 = arith.constant 11 : i32
    %cst_54 = arith.constant 1.000000e+00 : f32
    %304 = vector.broadcast %cst_54 : f32 to vector<1x16xf32>
    %305 = arith.cmpf olt, %296, %304 : vector<1x16xf32>
    %306 = arith.extui %305 : vector<1x16xi1> to vector<1x16xi32>
    %307 = arith.sitofp %306 : vector<1x16xi32> to vector<1x16xf32>
    %308 = arith.mulf %27, %307 : vector<1x16xf32>
    %309 = arith.addf %296, %308 : vector<1x16xf32>
    %cst_55 = arith.constant 9.900000e-01 : f32
    %310 = vector.broadcast %cst_55 : f32 to vector<1x16xf32>
    %311 = arith.cmpf ogt, %309, %310 : vector<1x16xf32>
    %312 = arith.extui %311 : vector<1x16xi1> to vector<1x16xi32>
    %313 = arith.sitofp %312 : vector<1x16xi32> to vector<1x16xf32>
    %314 = arith.mulf %313, %307 : vector<1x16xf32>
    %315 = arith.addf %296, %308 : vector<1x16xf32>
    %cst_56 = arith.constant 1.000000e+00 : f32
    %316 = vector.broadcast %cst_56 : f32 to vector<1x16xf32>
    %317 = arith.subf %316, %315 : vector<1x16xf32>
    %318 = arith.mulf %314, %317 : vector<1x16xf32>
    %319 = arith.addf %294, %318 : vector<1x16xf32>
    %320 = arith.mulf %314, %319 : vector<1x16xf32>
    %321 = arith.addf %315, %320 : vector<1x16xf32>
    %322 = arith.mulf %314, %319 : vector<1x16xf32>
    %323 = arith.addf %308, %322 : vector<1x16xf32>
    %cst_57 = arith.constant 1.000000e+00 : f32
    %324 = vector.broadcast %cst_57 : f32 to vector<1x16xf32>
    %325 = arith.subf %324, %323 : vector<1x16xf32>
    %326 = arith.mulf %325, %302 : vector<1x16xf32>
    %327 = arith.addf %326, %323 : vector<1x16xf32>
    %328 = arith.addf %303, %307 : vector<1x16xf32>
    %c12_i32 = arith.constant 12 : i32
    %cst_58 = arith.constant 1.000000e+00 : f32
    %329 = vector.broadcast %cst_58 : f32 to vector<1x16xf32>
    %330 = arith.cmpf olt, %321, %329 : vector<1x16xf32>
    %331 = arith.extui %330 : vector<1x16xi1> to vector<1x16xi32>
    %332 = arith.sitofp %331 : vector<1x16xi32> to vector<1x16xf32>
    %333 = arith.mulf %27, %332 : vector<1x16xf32>
    %334 = arith.addf %321, %333 : vector<1x16xf32>
    %cst_59 = arith.constant 9.900000e-01 : f32
    %335 = vector.broadcast %cst_59 : f32 to vector<1x16xf32>
    %336 = arith.cmpf ogt, %334, %335 : vector<1x16xf32>
    %337 = arith.extui %336 : vector<1x16xi1> to vector<1x16xi32>
    %338 = arith.sitofp %337 : vector<1x16xi32> to vector<1x16xf32>
    %339 = arith.mulf %338, %332 : vector<1x16xf32>
    %340 = arith.addf %321, %333 : vector<1x16xf32>
    %cst_60 = arith.constant 1.000000e+00 : f32
    %341 = vector.broadcast %cst_60 : f32 to vector<1x16xf32>
    %342 = arith.subf %341, %340 : vector<1x16xf32>
    %343 = arith.mulf %339, %342 : vector<1x16xf32>
    %344 = arith.addf %319, %343 : vector<1x16xf32>
    %345 = arith.mulf %339, %344 : vector<1x16xf32>
    %346 = arith.addf %340, %345 : vector<1x16xf32>
    %347 = arith.mulf %339, %344 : vector<1x16xf32>
    %348 = arith.addf %333, %347 : vector<1x16xf32>
    %cst_61 = arith.constant 1.000000e+00 : f32
    %349 = vector.broadcast %cst_61 : f32 to vector<1x16xf32>
    %350 = arith.subf %349, %348 : vector<1x16xf32>
    %351 = arith.mulf %350, %327 : vector<1x16xf32>
    %352 = arith.addf %351, %348 : vector<1x16xf32>
    %353 = arith.addf %328, %332 : vector<1x16xf32>
    %c13_i32 = arith.constant 13 : i32
    %cst_62 = arith.constant 1.000000e+00 : f32
    %354 = vector.broadcast %cst_62 : f32 to vector<1x16xf32>
    %355 = arith.cmpf olt, %346, %354 : vector<1x16xf32>
    %356 = arith.extui %355 : vector<1x16xi1> to vector<1x16xi32>
    %357 = arith.sitofp %356 : vector<1x16xi32> to vector<1x16xf32>
    %358 = arith.mulf %27, %357 : vector<1x16xf32>
    %359 = arith.addf %346, %358 : vector<1x16xf32>
    %cst_63 = arith.constant 9.900000e-01 : f32
    %360 = vector.broadcast %cst_63 : f32 to vector<1x16xf32>
    %361 = arith.cmpf ogt, %359, %360 : vector<1x16xf32>
    %362 = arith.extui %361 : vector<1x16xi1> to vector<1x16xi32>
    %363 = arith.sitofp %362 : vector<1x16xi32> to vector<1x16xf32>
    %364 = arith.mulf %363, %357 : vector<1x16xf32>
    %365 = arith.addf %346, %358 : vector<1x16xf32>
    %cst_64 = arith.constant 1.000000e+00 : f32
    %366 = vector.broadcast %cst_64 : f32 to vector<1x16xf32>
    %367 = arith.subf %366, %365 : vector<1x16xf32>
    %368 = arith.mulf %364, %367 : vector<1x16xf32>
    %369 = arith.addf %344, %368 : vector<1x16xf32>
    %370 = arith.mulf %364, %369 : vector<1x16xf32>
    %371 = arith.addf %365, %370 : vector<1x16xf32>
    %372 = arith.mulf %364, %369 : vector<1x16xf32>
    %373 = arith.addf %358, %372 : vector<1x16xf32>
    %cst_65 = arith.constant 1.000000e+00 : f32
    %374 = vector.broadcast %cst_65 : f32 to vector<1x16xf32>
    %375 = arith.subf %374, %373 : vector<1x16xf32>
    %376 = arith.mulf %375, %352 : vector<1x16xf32>
    %377 = arith.addf %376, %373 : vector<1x16xf32>
    %378 = arith.addf %353, %357 : vector<1x16xf32>
    %c14_i32 = arith.constant 14 : i32
    %cst_66 = arith.constant 1.000000e+00 : f32
    %379 = vector.broadcast %cst_66 : f32 to vector<1x16xf32>
    %380 = arith.cmpf olt, %371, %379 : vector<1x16xf32>
    %381 = arith.extui %380 : vector<1x16xi1> to vector<1x16xi32>
    %382 = arith.sitofp %381 : vector<1x16xi32> to vector<1x16xf32>
    %383 = arith.mulf %27, %382 : vector<1x16xf32>
    %384 = arith.addf %371, %383 : vector<1x16xf32>
    %cst_67 = arith.constant 9.900000e-01 : f32
    %385 = vector.broadcast %cst_67 : f32 to vector<1x16xf32>
    %386 = arith.cmpf ogt, %384, %385 : vector<1x16xf32>
    %387 = arith.extui %386 : vector<1x16xi1> to vector<1x16xi32>
    %388 = arith.sitofp %387 : vector<1x16xi32> to vector<1x16xf32>
    %389 = arith.mulf %388, %382 : vector<1x16xf32>
    %390 = arith.addf %371, %383 : vector<1x16xf32>
    %cst_68 = arith.constant 1.000000e+00 : f32
    %391 = vector.broadcast %cst_68 : f32 to vector<1x16xf32>
    %392 = arith.subf %391, %390 : vector<1x16xf32>
    %393 = arith.mulf %389, %392 : vector<1x16xf32>
    %394 = arith.addf %369, %393 : vector<1x16xf32>
    %395 = arith.mulf %389, %394 : vector<1x16xf32>
    %396 = arith.addf %390, %395 : vector<1x16xf32>
    %397 = arith.mulf %389, %394 : vector<1x16xf32>
    %398 = arith.addf %383, %397 : vector<1x16xf32>
    %cst_69 = arith.constant 1.000000e+00 : f32
    %399 = vector.broadcast %cst_69 : f32 to vector<1x16xf32>
    %400 = arith.subf %399, %398 : vector<1x16xf32>
    %401 = arith.mulf %400, %377 : vector<1x16xf32>
    %402 = arith.addf %401, %398 : vector<1x16xf32>
    %403 = arith.addf %378, %382 : vector<1x16xf32>
    %c15_i32 = arith.constant 15 : i32
    %cst_70 = arith.constant 1.000000e+00 : f32
    %404 = vector.broadcast %cst_70 : f32 to vector<1x16xf32>
    %405 = arith.cmpf olt, %396, %404 : vector<1x16xf32>
    %406 = arith.extui %405 : vector<1x16xi1> to vector<1x16xi32>
    %407 = arith.sitofp %406 : vector<1x16xi32> to vector<1x16xf32>
    %408 = arith.mulf %27, %407 : vector<1x16xf32>
    %409 = arith.addf %396, %408 : vector<1x16xf32>
    %cst_71 = arith.constant 9.900000e-01 : f32
    %410 = vector.broadcast %cst_71 : f32 to vector<1x16xf32>
    %411 = arith.cmpf ogt, %409, %410 : vector<1x16xf32>
    %412 = arith.extui %411 : vector<1x16xi1> to vector<1x16xi32>
    %413 = arith.sitofp %412 : vector<1x16xi32> to vector<1x16xf32>
    %414 = arith.mulf %413, %407 : vector<1x16xf32>
    %415 = arith.addf %396, %408 : vector<1x16xf32>
    %cst_72 = arith.constant 1.000000e+00 : f32
    %416 = vector.broadcast %cst_72 : f32 to vector<1x16xf32>
    %417 = arith.subf %416, %415 : vector<1x16xf32>
    %418 = arith.mulf %414, %417 : vector<1x16xf32>
    %419 = arith.addf %394, %418 : vector<1x16xf32>
    %420 = arith.mulf %414, %419 : vector<1x16xf32>
    %421 = arith.addf %415, %420 : vector<1x16xf32>
    %422 = arith.mulf %414, %419 : vector<1x16xf32>
    %423 = arith.addf %408, %422 : vector<1x16xf32>
    %cst_73 = arith.constant 1.000000e+00 : f32
    %424 = vector.broadcast %cst_73 : f32 to vector<1x16xf32>
    %425 = arith.subf %424, %423 : vector<1x16xf32>
    %426 = arith.mulf %425, %402 : vector<1x16xf32>
    %427 = arith.addf %426, %423 : vector<1x16xf32>
    %428 = arith.addf %403, %407 : vector<1x16xf32>
    %c16_i32_74 = arith.constant 16 : i32
    %cst_75 = arith.constant 1.000000e+00 : f32
    %429 = vector.broadcast %cst_75 : f32 to vector<1x16xf32>
    %430 = arith.cmpf olt, %421, %429 : vector<1x16xf32>
    %431 = arith.extui %430 : vector<1x16xi1> to vector<1x16xi32>
    %432 = arith.sitofp %431 : vector<1x16xi32> to vector<1x16xf32>
    %433 = arith.mulf %27, %432 : vector<1x16xf32>
    %434 = arith.addf %421, %433 : vector<1x16xf32>
    %cst_76 = arith.constant 9.900000e-01 : f32
    %435 = vector.broadcast %cst_76 : f32 to vector<1x16xf32>
    %436 = arith.cmpf ogt, %434, %435 : vector<1x16xf32>
    %437 = arith.extui %436 : vector<1x16xi1> to vector<1x16xi32>
    %438 = arith.sitofp %437 : vector<1x16xi32> to vector<1x16xf32>
    %439 = arith.mulf %438, %432 : vector<1x16xf32>
    %440 = arith.addf %421, %433 : vector<1x16xf32>
    %cst_77 = arith.constant 1.000000e+00 : f32
    %441 = vector.broadcast %cst_77 : f32 to vector<1x16xf32>
    %442 = arith.subf %441, %440 : vector<1x16xf32>
    %443 = arith.mulf %439, %442 : vector<1x16xf32>
    %444 = arith.addf %419, %443 : vector<1x16xf32>
    %445 = arith.mulf %439, %444 : vector<1x16xf32>
    %446 = arith.addf %440, %445 : vector<1x16xf32>
    %447 = arith.mulf %439, %444 : vector<1x16xf32>
    %448 = arith.addf %433, %447 : vector<1x16xf32>
    %cst_78 = arith.constant 1.000000e+00 : f32
    %449 = vector.broadcast %cst_78 : f32 to vector<1x16xf32>
    %450 = arith.subf %449, %448 : vector<1x16xf32>
    %451 = arith.mulf %450, %427 : vector<1x16xf32>
    %452 = arith.addf %451, %448 : vector<1x16xf32>
    %453 = arith.addf %428, %432 : vector<1x16xf32>
    %c17_i32 = arith.constant 17 : i32
    %cst_79 = arith.constant 1.000000e+00 : f32
    %454 = vector.broadcast %cst_79 : f32 to vector<1x16xf32>
    %455 = arith.cmpf olt, %446, %454 : vector<1x16xf32>
    %456 = arith.extui %455 : vector<1x16xi1> to vector<1x16xi32>
    %457 = arith.sitofp %456 : vector<1x16xi32> to vector<1x16xf32>
    %458 = arith.mulf %27, %457 : vector<1x16xf32>
    %459 = arith.addf %446, %458 : vector<1x16xf32>
    %cst_80 = arith.constant 9.900000e-01 : f32
    %460 = vector.broadcast %cst_80 : f32 to vector<1x16xf32>
    %461 = arith.cmpf ogt, %459, %460 : vector<1x16xf32>
    %462 = arith.extui %461 : vector<1x16xi1> to vector<1x16xi32>
    %463 = arith.sitofp %462 : vector<1x16xi32> to vector<1x16xf32>
    %464 = arith.mulf %463, %457 : vector<1x16xf32>
    %465 = arith.addf %446, %458 : vector<1x16xf32>
    %cst_81 = arith.constant 1.000000e+00 : f32
    %466 = vector.broadcast %cst_81 : f32 to vector<1x16xf32>
    %467 = arith.subf %466, %465 : vector<1x16xf32>
    %468 = arith.mulf %464, %467 : vector<1x16xf32>
    %469 = arith.addf %444, %468 : vector<1x16xf32>
    %470 = arith.mulf %464, %469 : vector<1x16xf32>
    %471 = arith.addf %465, %470 : vector<1x16xf32>
    %472 = arith.mulf %464, %469 : vector<1x16xf32>
    %473 = arith.addf %458, %472 : vector<1x16xf32>
    %cst_82 = arith.constant 1.000000e+00 : f32
    %474 = vector.broadcast %cst_82 : f32 to vector<1x16xf32>
    %475 = arith.subf %474, %473 : vector<1x16xf32>
    %476 = arith.mulf %475, %452 : vector<1x16xf32>
    %477 = arith.addf %476, %473 : vector<1x16xf32>
    %478 = arith.addf %453, %457 : vector<1x16xf32>
    %c18_i32 = arith.constant 18 : i32
    %cst_83 = arith.constant 1.000000e+00 : f32
    %479 = vector.broadcast %cst_83 : f32 to vector<1x16xf32>
    %480 = arith.cmpf olt, %471, %479 : vector<1x16xf32>
    %481 = arith.extui %480 : vector<1x16xi1> to vector<1x16xi32>
    %482 = arith.sitofp %481 : vector<1x16xi32> to vector<1x16xf32>
    %483 = arith.mulf %27, %482 : vector<1x16xf32>
    %484 = arith.addf %471, %483 : vector<1x16xf32>
    %cst_84 = arith.constant 9.900000e-01 : f32
    %485 = vector.broadcast %cst_84 : f32 to vector<1x16xf32>
    %486 = arith.cmpf ogt, %484, %485 : vector<1x16xf32>
    %487 = arith.extui %486 : vector<1x16xi1> to vector<1x16xi32>
    %488 = arith.sitofp %487 : vector<1x16xi32> to vector<1x16xf32>
    %489 = arith.mulf %488, %482 : vector<1x16xf32>
    %490 = arith.addf %471, %483 : vector<1x16xf32>
    %cst_85 = arith.constant 1.000000e+00 : f32
    %491 = vector.broadcast %cst_85 : f32 to vector<1x16xf32>
    %492 = arith.subf %491, %490 : vector<1x16xf32>
    %493 = arith.mulf %489, %492 : vector<1x16xf32>
    %494 = arith.addf %469, %493 : vector<1x16xf32>
    %495 = arith.mulf %489, %494 : vector<1x16xf32>
    %496 = arith.addf %490, %495 : vector<1x16xf32>
    %497 = arith.mulf %489, %494 : vector<1x16xf32>
    %498 = arith.addf %483, %497 : vector<1x16xf32>
    %cst_86 = arith.constant 1.000000e+00 : f32
    %499 = vector.broadcast %cst_86 : f32 to vector<1x16xf32>
    %500 = arith.subf %499, %498 : vector<1x16xf32>
    %501 = arith.mulf %500, %477 : vector<1x16xf32>
    %502 = arith.addf %501, %498 : vector<1x16xf32>
    %503 = arith.addf %478, %482 : vector<1x16xf32>
    %c19_i32 = arith.constant 19 : i32
    %cst_87 = arith.constant 1.000000e+00 : f32
    %504 = vector.broadcast %cst_87 : f32 to vector<1x16xf32>
    %505 = arith.cmpf olt, %496, %504 : vector<1x16xf32>
    %506 = arith.extui %505 : vector<1x16xi1> to vector<1x16xi32>
    %507 = arith.sitofp %506 : vector<1x16xi32> to vector<1x16xf32>
    %508 = arith.mulf %27, %507 : vector<1x16xf32>
    %509 = arith.addf %496, %508 : vector<1x16xf32>
    %cst_88 = arith.constant 9.900000e-01 : f32
    %510 = vector.broadcast %cst_88 : f32 to vector<1x16xf32>
    %511 = arith.cmpf ogt, %509, %510 : vector<1x16xf32>
    %512 = arith.extui %511 : vector<1x16xi1> to vector<1x16xi32>
    %513 = arith.sitofp %512 : vector<1x16xi32> to vector<1x16xf32>
    %514 = arith.mulf %513, %507 : vector<1x16xf32>
    %515 = arith.addf %496, %508 : vector<1x16xf32>
    %cst_89 = arith.constant 1.000000e+00 : f32
    %516 = vector.broadcast %cst_89 : f32 to vector<1x16xf32>
    %517 = arith.subf %516, %515 : vector<1x16xf32>
    %518 = arith.mulf %514, %517 : vector<1x16xf32>
    %519 = arith.addf %494, %518 : vector<1x16xf32>
    %520 = arith.mulf %514, %519 : vector<1x16xf32>
    %521 = arith.addf %515, %520 : vector<1x16xf32>
    %522 = arith.mulf %514, %519 : vector<1x16xf32>
    %523 = arith.addf %508, %522 : vector<1x16xf32>
    %cst_90 = arith.constant 1.000000e+00 : f32
    %524 = vector.broadcast %cst_90 : f32 to vector<1x16xf32>
    %525 = arith.subf %524, %523 : vector<1x16xf32>
    %526 = arith.mulf %525, %502 : vector<1x16xf32>
    %527 = arith.addf %526, %523 : vector<1x16xf32>
    %528 = arith.addf %503, %507 : vector<1x16xf32>
    %cst_91 = arith.constant 0.000000e+00 : f32
    %529 = vector.shape_cast %527 : vector<1x16xf32> to vector<1x16xf32>
    %530 = vector.broadcast %529 : vector<1x16xf32> to vector<16x16xf32>
    %531 = vector.broadcast %cst_91 : f32 to vector<16x16xf32>
    %532 = arith.select %4, %530, %531 : vector<16x16xi1>, vector<16x16xf32>
    %cst_92 = arith.constant dense<0.000000e+00> : vector<16xf32>
    %533 = vector.multi_reduction <add>, %532, %cst_92 [1] : vector<16x16xf32> to vector<16xf32>
    %534 = vector.shape_cast %533 : vector<16xf32> to vector<16x1xf32>
    %535 = arith.addf %528, %519 : vector<1x16xf32>
    %cst_93 = arith.constant 0.000000e+00 : f32
    %536 = vector.shape_cast %535 : vector<1x16xf32> to vector<1x16xf32>
    %537 = vector.broadcast %536 : vector<1x16xf32> to vector<16x16xf32>
    %538 = vector.broadcast %cst_93 : f32 to vector<16x16xf32>
    %539 = arith.select %4, %537, %538 : vector<16x16xi1>, vector<16x16xf32>
    %cst_94 = arith.constant dense<0.000000e+00> : vector<16xf32>
    %540 = vector.multi_reduction <add>, %539, %cst_94 [1] : vector<16x16xf32> to vector<16xf32>
    %541 = vector.shape_cast %540 : vector<16xf32> to vector<16x1xf32>
    %542 = arith.index_cast %8 : i32 to index
    %c0_95 = arith.constant 0 : index
    %543 = vector.load %arg6[%542, %c0_95] : memref<16x1xf32, #tpu.memory_space<vmem>>, vector<16x1xf32>
    tpu.vector_store %arg6[%542, %c0_95], %534 {strides = array<i32>} : memref<16x1xf32, #tpu.memory_space<vmem>>, vector<16x1xf32>,
    %544 = arith.index_cast %8 : i32 to index
    %c0_96 = arith.constant 0 : index
    %545 = vector.load %arg5[%544, %c0_96] : memref<16x1xf32, #tpu.memory_space<vmem>>, vector<16x1xf32>
    tpu.vector_store %arg5[%544, %c0_96], %541 {strides = array<i32>} : memref<16x1xf32, #tpu.memory_space<vmem>>, vector<16x1xf32>,
    %c1_i32_97 = arith.constant 1 : i32
    %c0_i32_98 = arith.constant 0 : i32
    %c1_i32_99 = arith.constant 1 : i32
    %546 = arith.muli %c0_i32_98, %c1_i32_99 : i32
    %c0_i32_100 = arith.constant 0 : i32
    %547 = arith.addi %c0_i32_100, %546 : i32
    %c16_i32_101 = arith.constant 16 : i32
    %548 = arith.muli %547, %c16_i32_101 : i32
    %549 = tpu.assume_multiple %548, 16 : i32
    %550 = arith.index_cast %549 : i32 to index
    %c0_102 = arith.constant 0 : index
    %551 = vector.load %arg6[%550, %c0_102] : memref<16x1xf32, #tpu.memory_space<vmem>>, vector<16x1xf32>
    %552 = arith.index_cast %549 : i32 to index
    %c0_103 = arith.constant 0 : index
    %553 = vector.load %arg1[%552, %c0_103] : memref<16x32xf32, #tpu.memory_space<vmem>>, vector<16x32xf32>
    %554 = vector.broadcast %551 : vector<16x1xf32> to vector<16x32xf32>
    %555 = arith.mulf %554, %553 : vector<16x32xf32>
    %556 = arith.index_cast %549 : i32 to index
    %c0_104 = arith.constant 0 : index
    %557 = vector.load %arg4[%556, %c0_104] : memref<16x32xf32, #tpu.memory_space<vmem>>, vector<16x32xf32>
    tpu.vector_store %arg4[%556, %c0_104], %555 {strides = array<i32>} : memref<16x32xf32, #tpu.memory_space<vmem>>, vector<16x32xf32>,
    %c1_i32_105 = arith.constant 1 : i32
    return
  }
  func.func @transform_0(%arg0: i32) -> (i32, i32) {
    %c0_i32 = arith.constant 0 : i32
    %c0_i32_0 = arith.constant 0 : i32
    return %arg0, %c0_i32 : i32, i32
  }
  func.func @transform_1(%arg0: i32) -> (i32, i32) {
    %c0_i32 = arith.constant 0 : i32
    %c0_i32_0 = arith.constant 0 : i32
    %c0_i32_1 = arith.constant 0 : i32
    return %c0_i32, %c0_i32_0 : i32, i32
  }
  func.func @transform_2(%arg0: i32) -> i32 {
    %c0_i32 = arith.constant 0 : i32
    %c0_i32_0 = arith.constant 0 : i32
    return %c0_i32 : i32
  }
  func.func @transform_3(%arg0: i32) -> (i32, i32) {
    %c0_i32 = arith.constant 0 : i32
    %c0_i32_0 = arith.constant 0 : i32
    return %arg0, %c0_i32 : i32, i32
  }
  func.func @transform_4(%arg0: i32) -> (i32, i32) {
    %c0_i32 = arith.constant 0 : i32
    %c0_i32_0 = arith.constant 0 : i32
    return %arg0, %c0_i32 : i32, i32
  }
}

</mosaic_0001>

<bundles_post_ra>
// kernel: tpu_custom_call.1
= control target key start
LH: loop header
LB: loop body
LE: loop exit
PB: predicated region body
PF: predicated region fallthrough
CT: control target
= control target key end

     0   :  { %11 = vsyncpa [#allocation5], 0  ;;  %s803_s0 = inlined_call_operand.hbm [shape: f32[16,32], index: 0, kind: input, shape index: {}]   ;;  %s804_s1 = inlined_call_operand.vmem [shape: f32[1,32], index: 1, kind: input, shape index: {}]   ;;  %s805_s2 = inlined_call_operand.<no memory space> [shape: f32[1], index: 2, kind: input, shape index: {}]   ;;  %s806_s3 = inlined_call_operand.hbm [shape: f32[16,32], index: 3, kind: output, shape index: {0}]   ;;  %s807_s4 = inlined_call_operand.vmem [shape: f32[16,1], index: 4, kind: output, shape index: {1}]  }
   0x1   :  { %12 = vsyncpa [#allocation6], 0  ;;  %s620_s15 = smov [#allocation4]   ;;  %s572_s19 = scalar_lea.hbm %s803_s0, 256 }
   0x2   :  { %s18_s16 = sshll.u32 %s620_s15, 4  ;;  %p573_p0 = scmp.ne.s32.totalorder %s803_s0, %s572_s19  ;;  %s19_s16 = int_to_ptr.vmem [resolvable:$true] %s18_s16 }
   0x3   :  { %p576_p1 = scmp.lt.u32.totalorder %s572_s19, %s803_s0 }
   0x5   :  { %p578_p2 = pnand %p576_p1, %p573_p0 }
   0x7   :  { %581 = shalt.err (!%p578_p2)
}
   0x8   :  { %s582_s24 = scalar_lea.vmem %s19_s16, 256  ;;  %p587_p4 = scmp.lt.s32.totalorder %s19_s16, %s19_s16 }
   0x9   :  { %p583_p3 = scmp.ne.s32.totalorder %s19_s16, %s582_s24  ;;  %p588_p5 = scmp.lt.s32.totalorder %s582_s24, %s582_s24 }
   0xb   :  { %p589_p6 = por %p588_p5, %p587_p4 }
   0xd   :  { %p590_p7 = pnand %p589_p6, %p583_p3 }
   0xf   :  { %593 = shalt.err (!%p590_p7)
}
  0x10   :  { %s621_s25 = smov 128   ;;  %s622_s26 = smov 8  }
  0x11   :  { %24 = dma.hbm_to_vmem [thread:$0]  %s803_s0, 256, %s19_s16, [#allocation5], %s621_s25, %s621_s25, %s622_s26  }
  0x12   :  { %616 = dma.done.wait [#allocation5], 256  }
  0x13   :  { %617 = vsyncadd [#allocation5], 4294967040  ;;  %v519_v0 = vld [vmem:[%s804_s1] ss:$0 sm:$0xff]  ;;  %v669_v1 = vld [vmem:[#allocation4] sm:$0xff]  ;;  %vm51_vm0 = vcmask 261120   ;;  %v34_v7 = vlaneseq  ;;  %v58_v10 = vstv %s805_s2 }
  0x14   :  { %v671_v2 = vld [vmem:[#allocation4 + $0x8] sm:$0xff]  ;;  %v49_v3 = vmul.f32 %v519_v0, %v669_v1  ;;  %vm63_vm3 = vcmask 130048   ;;  %v623_v32 = vmov 0.0   ;;  %s625_s8 = smov [#allocation7]  }
  0x15   :  { %v50_v4 = vmul.f32 %v519_v0, %v671_v2  ;;  %v677_v8 = vshrl.u32 %v34_v7, 7  ;;  %v679_v9 = vand.u32 127, %v34_v7  ;;  %s503_s9 = sshll.u32 %s625_s8, 4  ;;  %s504_s9 = int_to_ptr.vmem [resolvable:$true] %s503_s9 }
  0x16   :  { %v52_v5 = vsel %vm51_vm0, %v49_v3, 0.0  ;;  %s594_s10 = scalar_lea.vmem %s504_s9, 256  ;;  %p599_p9 = scmp.lt.s32.totalorder %s504_s9, %s504_s9 }
  0x17   :  { %53 = vadd.xlane.f32.xlu0 %v52_v5  ;;  %v55_v6 = vsel %vm51_vm0, %v50_v4, 0.0  ;;  %v685_v12 = vadd.s32 8, %v677_v8  ;;  %vm39_vm1 = vcmp.eq.s32.totalorder %v677_v8, %v679_v9  ;;  %p595_p8 = scmp.ne.s32.totalorder %s504_s9, %s594_s10  ;;  %p600_p10 = scmp.lt.s32.totalorder %s594_s10, %s594_s10 }
  0x19   :  { %vm40_vm2 = vcmp.eq.s32.totalorder %v685_v12, %v679_v9  ;;  %p601_p11 = por %p600_p10, %p599_p9 }
  0x1b   :  { %56 = vadd.xlane.f32.xlu0 %v55_v6  ;;  %p602_p12 = pnand %p601_p11, %p595_p8 }
  0xa4   :  { %v54_v11 = vpop.xlane.xlu0 %53 }
  0xa5   :  { %v59_v13 = vadd.f32 %v58_v10, %v54_v11 }
  0xa7   :  { %v61_v15 = vsel %vm39_vm1, %v59_v13, 0.0 }
  0xa8   :  { %v57_v14 = vpop.xlane.xlu0 %56  ;;  %v64_v18 = vsel %vm63_vm3, %v61_v15, 0.0 }
  0xa9   :  { %v60_v16 = vadd.f32 %v58_v10, %v57_v14 }
  0xab   :  { %v62_v17 = vsel %vm40_vm2, %v60_v16, 0.0 }
  0xac   :  { %v65_v19 = vsel %vm63_vm3, %v62_v17, 0.0 }
  0xad   :  { %v66_v20 = vadd.f32 %v65_v19, %v64_v18 }
  0xaf   :  { %v67_v21 = vrot.slane %v66_v20, 4 }
  0xb1   :  { %v68_v22 = vadd.f32 %v67_v21, %v66_v20 }
  0xb3   :  { %v69_v23 = vrot.slane %v68_v22, 2 }
  0xb5   :  { %v70_v24 = vadd.f32 %v69_v23, %v68_v22 }
  0xb7   :  { %v71_v25 = vrot.slane %v70_v24, 1 }
  0xb9   :  { %v72_v26 = vadd.f32 %v71_v25, %v70_v24 }
  0xbb   :  { %v520_v27 = vmul.f32 -1.442695, %v72_v26 }
  0xbd   :  { %568 = vpow2.f32 %v520_v27 }
  0xc7   :  { %v569_v28 = vpop.eup %568 }
  0xc8   :  { %v76_v29 = vadd.f32 1.0, %v569_v28 }
  0xca   :  { %570 = vrcp.f32 %v76_v29 }
  0xd4   :  { %v699_v30 = vpop.eup %570 }
  0xd5   :  { %vm84_vm4 = vcmp.gt.f32.partialorder %v699_v30, 0.99  ;;  %v88_v31 = vsub.f32 1.0, %v699_v30 }
  0xd6   :  { %v521_v33 = vsel %vm84_vm4, 1.0, %v623_v32 }
  0xd7   :  { %v89_v34 = vmul.f32 %v521_v33, %v88_v31 }
  0xd9   :  { %v91_v35 = vmul.f32 %v521_v33, %v89_v34 }
  0xdb   :  { %v92_v36 = vadd.f32 %v699_v30, %v91_v35 }
  0xdd   :  { %vm98_vm5 = vcmp.lt.f32.partialorder %v92_v36, 1.0  ;;  %v94_v44 = vsub.f32 1.0, %v92_v36 }
  0xde   :  { %v522_v37 = vsel %vm98_vm5, 1.0, %v623_v32 }
  0xdf   :  { %v101_v38 = vmul.f32 %v699_v30, %v522_v37  ;;  %v95_v47 = vmul.f32 0.0, %v94_v44  ;;  %v116_v51 = vadd.f32 1.0, %v522_v37 }
  0xe1   :  { %v102_v39 = vadd.f32 %v101_v38, %v92_v36  ;;  %v96_v52 = vadd.f32 %v95_v47, %v92_v36 }
  0xe3   :  { %vm103_vm6 = vcmp.gt.f32.partialorder %v102_v39, 0.99  ;;  %v107_v42 = vsub.f32 1.0, %v102_v39 }
  0xe4   :  { %v523_v40 = vsel %vm103_vm6, 1.0, %v623_v32 }
  0xe5   :  { %v106_v41 = vmul.f32 %v523_v40, %v522_v37 }
  0xe7   :  { %v108_v43 = vmul.f32 %v107_v42, %v106_v41 }
  0xe9   :  { %v109_v45 = vadd.f32 %v108_v43, %v89_v34 }
  0xeb   :  { %v110_v46 = vmul.f32 %v109_v45, %v106_v41 }
  0xed   :  { %v111_v48 = vadd.f32 %v110_v46, %v102_v39  ;;  %v112_v49 = vadd.f32 %v110_v46, %v101_v38 }
  0xef   :  { %v113_v50 = vsub.f32 1.0, %v112_v49  ;;  %vm117_vm7 = vcmp.lt.f32.partialorder %v111_v48, 1.0 }
  0xf0   :  { %v524_v53 = vsel %vm117_vm7, 1.0, %v623_v32 }
  0xf1   :  { %v120_v54 = vmul.f32 %v699_v30, %v524_v53  ;;  %v135_v55 = vadd.f32 %v524_v53, %v116_v51  ;;  %v114_v56 = vmul.f32 %v113_v50, %v96_v52 }
  0xf3   :  { %v121_v57 = vadd.f32 %v120_v54, %v111_v48  ;;  %v115_v58 = vadd.f32 %v114_v56, %v112_v49 }
  0xf5   :  { %vm122_vm8 = vcmp.gt.f32.partialorder %v121_v57, 0.99  ;;  %v126_v61 = vsub.f32 1.0, %v121_v57 }
  0xf6   :  { %v525_v59 = vsel %vm122_vm8, 1.0, %v623_v32 }
  0xf7   :  { %v125_v60 = vmul.f32 %v525_v59, %v524_v53 }
  0xf9   :  { %v127_v62 = vmul.f32 %v126_v61, %v125_v60 }
  0xfb   :  { %v128_v63 = vadd.f32 %v127_v62, %v109_v45 }
  0xfd   :  { %v129_v0 = vmul.f32 %v128_v63, %v125_v60 }
  0xff   :  { %v130_v3 = vadd.f32 %v129_v0, %v121_v57  ;;  %v131_v4 = vadd.f32 %v129_v0, %v120_v54 }
 0x101   :  { %v132_v5 = vsub.f32 1.0, %v131_v4  ;;  %vm136_vm9 = vcmp.lt.f32.partialorder %v130_v3, 1.0 }
 0x102   :  { %v526_v6 = vsel %vm136_vm9, 1.0, %v623_v32 }
 0x103   :  { %v139_v7 = vmul.f32 %v699_v30, %v526_v6  ;;  %v154_v10 = vadd.f32 %v526_v6, %v135_v55  ;;  %v133_v11 = vmul.f32 %v132_v5, %v115_v58 }
 0x105   :  { %v140_v13 = vadd.f32 %v139_v7, %v130_v3  ;;  %v134_v14 = vadd.f32 %v133_v11, %v131_v4 }
 0x107   :  { %vm141_vm10 = vcmp.gt.f32.partialorder %v140_v13, 0.99  ;;  %v145_v17 = vsub.f32 1.0, %v140_v13 }
 0x108   :  { %v527_v15 = vsel %vm141_vm10, 1.0, %v623_v32 }
 0x109   :  { %v144_v16 = vmul.f32 %v527_v15, %v526_v6 }
 0x10b   :  { %v146_v18 = vmul.f32 %v145_v17, %v144_v16 }
 0x10d   :  { %v147_v19 = vadd.f32 %v146_v18, %v128_v63 }
 0x10f   :  { %v148_v20 = vmul.f32 %v147_v19, %v144_v16 }
 0x111   :  { %v149_v21 = vadd.f32 %v148_v20, %v140_v13  ;;  %v150_v22 = vadd.f32 %v148_v20, %v139_v7 }
 0x113   :  { %v151_v23 = vsub.f32 1.0, %v150_v22  ;;  %vm155_vm11 = vcmp.lt.f32.partialorder %v149_v21, 1.0 }
 0x114   :  { %v528_v24 = vsel %vm155_vm11, 1.0, %v623_v32 }
 0x115   :  { %v158_v25 = vmul.f32 %v699_v30, %v528_v24  ;;  %v173_v26 = vadd.f32 %v528_v24, %v154_v10  ;;  %v152_v27 = vmul.f32 %v151_v23, %v134_v14 }
 0x117   :  { %v159_v28 = vadd.f32 %v158_v25, %v149_v21  ;;  %v153_v29 = vadd.f32 %v152_v27, %v150_v22 }
 0x119   :  { %vm160_vm12 = vcmp.gt.f32.partialorder %v159_v28, 0.99  ;;  %v164_v34 = vsub.f32 1.0, %v159_v28 }
 0x11a   :  { %v529_v31 = vsel %vm160_vm12, 1.0, %v623_v32 }
 0x11b   :  { %v163_v33 = vmul.f32 %v529_v31, %v528_v24 }
 0x11d   :  { %v165_v35 = vmul.f32 %v164_v34, %v163_v33 }
 0x11f   :  { %v166_v36 = vadd.f32 %v165_v35, %v147_v19 }
 0x121   :  { %v167_v37 = vmul.f32 %v166_v36, %v163_v33 }
 0x123   :  { %v168_v38 = vadd.f32 %v167_v37, %v159_v28  ;;  %v169_v39 = vadd.f32 %v167_v37, %v158_v25 }
 0x125   :  { %v170_v40 = vsub.f32 1.0, %v169_v39  ;;  %vm174_vm13 = vcmp.lt.f32.partialorder %v168_v38, 1.0 }
 0x126   :  { %v530_v41 = vsel %vm174_vm13, 1.0, %v623_v32 }
 0x127   :  { %v177_v42 = vmul.f32 %v699_v30, %v530_v41  ;;  %v192_v43 = vadd.f32 %v530_v41, %v173_v26  ;;  %v171_v44 = vmul.f32 %v170_v40, %v153_v29 }
 0x129   :  { %v178_v45 = vadd.f32 %v177_v42, %v168_v38  ;;  %v172_v46 = vadd.f32 %v171_v44, %v169_v39 }
 0x12b   :  { %vm179_vm14 = vcmp.gt.f32.partialorder %v178_v45, 0.99  ;;  %v183_v49 = vsub.f32 1.0, %v178_v45 }
 0x12c   :  { %v531_v47 = vsel %vm179_vm14, 1.0, %v623_v32 }
 0x12d   :  { %v182_v48 = vmul.f32 %v531_v47, %v530_v41 }
 0x12f   :  { %v184_v50 = vmul.f32 %v183_v49, %v182_v48 }
 0x131   :  { %v185_v51 = vadd.f32 %v184_v50, %v166_v36 }
 0x133   :  { %v186_v52 = vmul.f32 %v185_v51, %v182_v48 }
 0x135   :  { %v187_v53 = vadd.f32 %v186_v52, %v178_v45  ;;  %v188_v54 = vadd.f32 %v186_v52, %v177_v42 }
 0x137   :  { %v189_v55 = vsub.f32 1.0, %v188_v54  ;;  %vm193_vm15 = vcmp.lt.f32.partialorder %v187_v53, 1.0 }
 0x138   :  { %v532_v56 = vsel %vm193_vm15, 1.0, %v623_v32 }
 0x139   :  { %v196_v57 = vmul.f32 %v699_v30, %v532_v56  ;;  %v211_v58 = vadd.f32 %v532_v56, %v192_v43  ;;  %v190_v59 = vmul.f32 %v189_v55, %v172_v46 }
 0x13b   :  { %v197_v60 = vadd.f32 %v196_v57, %v187_v53  ;;  %v191_v61 = vadd.f32 %v190_v59, %v188_v54 }
 0x13d   :  { %vm198_vm4 = vcmp.gt.f32.partialorder %v197_v60, 0.99  ;;  %v202_v0 = vsub.f32 1.0, %v197_v60 }
 0x13e   :  { %v533_v62 = vsel %vm198_vm4, 1.0, %v623_v32 }
 0x13f   :  { %v201_v63 = vmul.f32 %v533_v62, %v532_v56 }
 0x141   :  { %v203_v3 = vmul.f32 %v202_v0, %v201_v63 }
 0x143   :  { %v204_v4 = vadd.f32 %v203_v3, %v185_v51 }
 0x145   :  { %v205_v5 = vmul.f32 %v204_v4, %v201_v63 }
 0x147   :  { %v206_v6 = vadd.f32 %v205_v5, %v197_v60  ;;  %v207_v7 = vadd.f32 %v205_v5, %v196_v57 }
 0x149   :  { %v208_v10 = vsub.f32 1.0, %v207_v7  ;;  %vm212_vm5 = vcmp.lt.f32.partialorder %v206_v6, 1.0 }
 0x14a   :  { %v534_v11 = vsel %vm212_vm5, 1.0, %v623_v32 }
 0x14b   :  { %v215_v13 = vmul.f32 %v699_v30, %v534_v11  ;;  %v230_v14 = vadd.f32 %v534_v11, %v211_v58  ;;  %v209_v15 = vmul.f32 %v208_v10, %v191_v61 }
 0x14d   :  { %v216_v16 = vadd.f32 %v215_v13, %v206_v6  ;;  %v210_v17 = vadd.f32 %v209_v15, %v207_v7 }
 0x14f   :  { %vm217_vm6 = vcmp.gt.f32.partialorder %v216_v16, 0.99  ;;  %v221_v20 = vsub.f32 1.0, %v216_v16 }
 0x150   :  { %v535_v18 = vsel %vm217_vm6, 1.0, %v623_v32 }
 0x151   :  { %v220_v19 = vmul.f32 %v535_v18, %v534_v11 }
 0x153   :  { %v222_v21 = vmul.f32 %v221_v20, %v220_v19 }
 0x155   :  { %v223_v22 = vadd.f32 %v222_v21, %v204_v4 }
 0x157   :  { %v224_v23 = vmul.f32 %v223_v22, %v220_v19 }
 0x159   :  { %v225_v24 = vadd.f32 %v224_v23, %v216_v16  ;;  %v226_v25 = vadd.f32 %v224_v23, %v215_v13 }
 0x15b   :  { %v227_v26 = vsub.f32 1.0, %v226_v25  ;;  %vm231_vm7 = vcmp.lt.f32.partialorder %v225_v24, 1.0 }
 0x15c   :  { %v536_v27 = vsel %vm231_vm7, 1.0, %v623_v32 }
 0x15d   :  { %v234_v28 = vmul.f32 %v699_v30, %v536_v27  ;;  %v249_v29 = vadd.f32 %v536_v27, %v230_v14  ;;  %v228_v31 = vmul.f32 %v227_v26, %v210_v17 }
 0x15f   :  { %v235_v33 = vadd.f32 %v234_v28, %v225_v24  ;;  %v229_v34 = vadd.f32 %v228_v31, %v226_v25 }
 0x161   :  { %vm236_vm8 = vcmp.gt.f32.partialorder %v235_v33, 0.99  ;;  %v240_v37 = vsub.f32 1.0, %v235_v33 }
 0x162   :  { %v537_v35 = vsel %vm236_vm8, 1.0, %v623_v32 }
 0x163   :  { %v239_v36 = vmul.f32 %v537_v35, %v536_v27 }
 0x165   :  { %v241_v38 = vmul.f32 %v240_v37, %v239_v36 }
 0x167   :  { %v242_v39 = vadd.f32 %v241_v38, %v223_v22 }
 0x169   :  { %v243_v40 = vmul.f32 %v242_v39, %v239_v36 }
 0x16b   :  { %v244_v41 = vadd.f32 %v243_v40, %v235_v33  ;;  %v245_v42 = vadd.f32 %v243_v40, %v234_v28 }
 0x16d   :  { %v246_v43 = vsub.f32 1.0, %v245_v42  ;;  %vm250_vm9 = vcmp.lt.f32.partialorder %v244_v41, 1.0 }
 0x16e   :  { %v538_v44 = vsel %vm250_vm9, 1.0, %v623_v32 }
 0x16f   :  { %v253_v45 = vmul.f32 %v699_v30, %v538_v44  ;;  %v268_v46 = vadd.f32 %v538_v44, %v249_v29  ;;  %v247_v47 = vmul.f32 %v246_v43, %v229_v34 }
 0x171   :  { %v254_v48 = vadd.f32 %v253_v45, %v244_v41  ;;  %v248_v49 = vadd.f32 %v247_v47, %v245_v42 }
 0x173   :  { %vm255_vm10 = vcmp.gt.f32.partialorder %v254_v48, 0.99  ;;  %v259_v52 = vsub.f32 1.0, %v254_v48 }
 0x174   :  { %v539_v50 = vsel %vm255_vm10, 1.0, %v623_v32 }
 0x175   :  { %v258_v51 = vmul.f32 %v539_v50, %v538_v44 }
 0x177   :  { %v260_v53 = vmul.f32 %v259_v52, %v258_v51 }
 0x179   :  { %v261_v54 = vadd.f32 %v260_v53, %v242_v39 }
 0x17b   :  { %v262_v55 = vmul.f32 %v261_v54, %v258_v51 }
 0x17d   :  { %v263_v56 = vadd.f32 %v262_v55, %v254_v48  ;;  %v264_v57 = vadd.f32 %v262_v55, %v253_v45 }
 0x17f   :  { %v265_v58 = vsub.f32 1.0, %v264_v57  ;;  %vm269_vm11 = vcmp.lt.f32.partialorder %v263_v56, 1.0 }
 0x180   :  { %v540_v59 = vsel %vm269_vm11, 1.0, %v623_v32 }
 0x181   :  { %v272_v60 = vmul.f32 %v699_v30, %v540_v59  ;;  %v287_v61 = vadd.f32 %v540_v59, %v268_v46  ;;  %v266_v62 = vmul.f32 %v265_v58, %v248_v49 }
 0x183   :  { %v273_v63 = vadd.f32 %v272_v60, %v263_v56  ;;  %v267_v0 = vadd.f32 %v266_v62, %v264_v57 }
 0x185   :  { %vm274_vm12 = vcmp.gt.f32.partialorder %v273_v63, 0.99  ;;  %v278_v5 = vsub.f32 1.0, %v273_v63 }
 0x186   :  { %v541_v3 = vsel %vm274_vm12, 1.0, %v623_v32 }
 0x187   :  { %v277_v4 = vmul.f32 %v541_v3, %v540_v59 }
 0x189   :  { %v279_v6 = vmul.f32 %v278_v5, %v277_v4 }
 0x18b   :  { %v280_v7 = vadd.f32 %v279_v6, %v261_v54 }
 0x18d   :  { %v281_v10 = vmul.f32 %v280_v7, %v277_v4 }
 0x18f   :  { %v282_v11 = vadd.f32 %v281_v10, %v273_v63  ;;  %v283_v13 = vadd.f32 %v281_v10, %v272_v60 }
 0x191   :  { %v284_v14 = vsub.f32 1.0, %v283_v13  ;;  %vm288_vm13 = vcmp.lt.f32.partialorder %v282_v11, 1.0 }
 0x192   :  { %v542_v15 = vsel %vm288_vm13, 1.0, %v623_v32 }
 0x193   :  { %v291_v16 = vmul.f32 %v699_v30, %v542_v15  ;;  %v306_v17 = vadd.f32 %v542_v15, %v287_v61  ;;  %v285_v18 = vmul.f32 %v284_v14, %v267_v0 }
 0x195   :  { %v292_v19 = vadd.f32 %v291_v16, %v282_v11  ;;  %v286_v20 = vadd.f32 %v285_v18, %v283_v13 }
 0x197   :  { %vm293_vm14 = vcmp.gt.f32.partialorder %v292_v19, 0.99  ;;  %v297_v23 = vsub.f32 1.0, %v292_v19 }
 0x198   :  { %v543_v21 = vsel %vm293_vm14, 1.0, %v623_v32 }
 0x199   :  { %v296_v22 = vmul.f32 %v543_v21, %v542_v15 }
 0x19b   :  { %v298_v24 = vmul.f32 %v297_v23, %v296_v22 }
 0x19d   :  { %v299_v25 = vadd.f32 %v298_v24, %v280_v7 }
 0x19f   :  { %v300_v26 = vmul.f32 %v299_v25, %v296_v22 }
 0x1a1   :  { %v301_v27 = vadd.f32 %v300_v26, %v292_v19  ;;  %v302_v28 = vadd.f32 %v300_v26, %v291_v16 }
 0x1a3   :  { %v303_v29 = vsub.f32 1.0, %v302_v28  ;;  %vm307_vm15 = vcmp.lt.f32.partialorder %v301_v27, 1.0 }
 0x1a4   :  { %v544_v31 = vsel %vm307_vm15, 1.0, %v623_v32 }
 0x1a5   :  { %v310_v33 = vmul.f32 %v699_v30, %v544_v31  ;;  %v325_v34 = vadd.f32 %v544_v31, %v306_v17  ;;  %v304_v35 = vmul.f32 %v303_v29, %v286_v20 }
 0x1a7   :  { %v311_v36 = vadd.f32 %v310_v33, %v301_v27  ;;  %v305_v37 = vadd.f32 %v304_v35, %v302_v28 }
 0x1a9   :  { %vm312_vm4 = vcmp.gt.f32.partialorder %v311_v36, 0.99  ;;  %v316_v40 = vsub.f32 1.0, %v311_v36 }
 0x1aa   :  { %v545_v38 = vsel %vm312_vm4, 1.0, %v623_v32 }
 0x1ab   :  { %v315_v39 = vmul.f32 %v545_v38, %v544_v31 }
 0x1ad   :  { %v317_v41 = vmul.f32 %v316_v40, %v315_v39 }
 0x1af   :  { %v318_v42 = vadd.f32 %v317_v41, %v299_v25 }
 0x1b1   :  { %v319_v43 = vmul.f32 %v318_v42, %v315_v39 }
 0x1b3   :  { %v320_v44 = vadd.f32 %v319_v43, %v311_v36  ;;  %v321_v45 = vadd.f32 %v319_v43, %v310_v33 }
 0x1b5   :  { %v322_v46 = vsub.f32 1.0, %v321_v45  ;;  %vm326_vm5 = vcmp.lt.f32.partialorder %v320_v44, 1.0 }
 0x1b6   :  { %v546_v47 = vsel %vm326_vm5, 1.0, %v623_v32 }
 0x1b7   :  { %v329_v48 = vmul.f32 %v699_v30, %v546_v47  ;;  %v344_v49 = vadd.f32 %v546_v47, %v325_v34  ;;  %v323_v50 = vmul.f32 %v322_v46, %v305_v37 }
 0x1b9   :  { %v330_v51 = vadd.f32 %v329_v48, %v320_v44  ;;  %v324_v52 = vadd.f32 %v323_v50, %v321_v45 }
 0x1bb   :  { %vm331_vm6 = vcmp.gt.f32.partialorder %v330_v51, 0.99  ;;  %v335_v55 = vsub.f32 1.0, %v330_v51 }
 0x1bc   :  { %v547_v53 = vsel %vm331_vm6, 1.0, %v623_v32 }
 0x1bd   :  { %v334_v54 = vmul.f32 %v547_v53, %v546_v47 }
 0x1bf   :  { %v336_v56 = vmul.f32 %v335_v55, %v334_v54 }
 0x1c1   :  { %v337_v57 = vadd.f32 %v336_v56, %v318_v42 }
 0x1c3   :  { %v338_v58 = vmul.f32 %v337_v57, %v334_v54 }
 0x1c5   :  { %v339_v59 = vadd.f32 %v338_v58, %v330_v51  ;;  %v340_v60 = vadd.f32 %v338_v58, %v329_v48 }
 0x1c7   :  { %v341_v61 = vsub.f32 1.0, %v340_v60  ;;  %vm345_vm7 = vcmp.lt.f32.partialorder %v339_v59, 1.0 }
 0x1c8   :  { %v548_v62 = vsel %vm345_vm7, 1.0, %v623_v32 }
 0x1c9   :  { %v348_v63 = vmul.f32 %v699_v30, %v548_v62  ;;  %v363_v0 = vadd.f32 %v548_v62, %v344_v49  ;;  %v342_v3 = vmul.f32 %v341_v61, %v324_v52 }
 0x1cb   :  { %v349_v4 = vadd.f32 %v348_v63, %v339_v59  ;;  %v343_v5 = vadd.f32 %v342_v3, %v340_v60 }
 0x1cd   :  { %vm350_vm8 = vcmp.gt.f32.partialorder %v349_v4, 0.99  ;;  %v354_v10 = vsub.f32 1.0, %v349_v4 }
 0x1ce   :  { %v549_v6 = vsel %vm350_vm8, 1.0, %v623_v32 }
 0x1cf   :  { %v353_v7 = vmul.f32 %v549_v6, %v548_v62 }
 0x1d1   :  { %v355_v11 = vmul.f32 %v354_v10, %v353_v7 }
 0x1d3   :  { %v356_v13 = vadd.f32 %v355_v11, %v337_v57 }
 0x1d5   :  { %v357_v14 = vmul.f32 %v356_v13, %v353_v7 }
 0x1d7   :  { %v358_v15 = vadd.f32 %v357_v14, %v349_v4  ;;  %v359_v16 = vadd.f32 %v357_v14, %v348_v63 }
 0x1d9   :  { %v360_v17 = vsub.f32 1.0, %v359_v16  ;;  %vm364_vm9 = vcmp.lt.f32.partialorder %v358_v15, 1.0 }
 0x1da   :  { %v550_v18 = vsel %vm364_vm9, 1.0, %v623_v32 }
 0x1db   :  { %v367_v19 = vmul.f32 %v699_v30, %v550_v18  ;;  %v382_v20 = vadd.f32 %v550_v18, %v363_v0  ;;  %v361_v21 = vmul.f32 %v360_v17, %v343_v5 }
 0x1dd   :  { %v368_v22 = vadd.f32 %v367_v19, %v358_v15  ;;  %v362_v23 = vadd.f32 %v361_v21, %v359_v16 }
 0x1df   :  { %vm369_vm10 = vcmp.gt.f32.partialorder %v368_v22, 0.99  ;;  %v373_v26 = vsub.f32 1.0, %v368_v22 }
 0x1e0   :  { %v551_v24 = vsel %vm369_vm10, 1.0, %v623_v32 }
 0x1e1   :  { %v372_v25 = vmul.f32 %v551_v24, %v550_v18 }
 0x1e3   :  { %v374_v27 = vmul.f32 %v373_v26, %v372_v25 }
 0x1e5   :  { %v375_v28 = vadd.f32 %v374_v27, %v356_v13 }
 0x1e7   :  { %v376_v29 = vmul.f32 %v375_v28, %v372_v25 }
 0x1e9   :  { %v377_v31 = vadd.f32 %v376_v29, %v368_v22  ;;  %v378_v33 = vadd.f32 %v376_v29, %v367_v19 }
 0x1eb   :  { %v379_v34 = vsub.f32 1.0, %v378_v33  ;;  %vm383_vm11 = vcmp.lt.f32.partialorder %v377_v31, 1.0 }
 0x1ec   :  { %v552_v35 = vsel %vm383_vm11, 1.0, %v623_v32 }
 0x1ed   :  { %v386_v36 = vmul.f32 %v699_v30, %v552_v35  ;;  %v380_v37 = vmul.f32 %v379_v34, %v362_v23  ;;  %v401_v16 = vadd.f32 %v552_v35, %v382_v20 }
 0x1ef   :  { %v387_v38 = vadd.f32 %v386_v36, %v377_v31  ;;  %v381_v39 = vadd.f32 %v380_v37, %v378_v33 }
 0x1f1   :  { %vm388_vm12 = vcmp.gt.f32.partialorder %v387_v38, 0.99  ;;  %v392_v42 = vsub.f32 1.0, %v387_v38 }
 0x1f2   :  { %v553_v40 = vsel %vm388_vm12, 1.0, %v623_v32 }
 0x1f3   :  { %v391_v41 = vmul.f32 %v553_v40, %v552_v35 }
 0x1f5   :  { %v393_v43 = vmul.f32 %v392_v42, %v391_v41 }
 0x1f7   :  { %v394_v44 = vadd.f32 %v393_v43, %v375_v28 }
 0x1f9   :  { %v395_v45 = vmul.f32 %v394_v44, %v391_v41 }
 0x1fb   :  { %v396_v46 = vadd.f32 %v395_v45, %v387_v38  ;;  %v397_v0 = vadd.f32 %v395_v45, %v386_v36 }
 0x1fd   :  { %vm402_vm13 = vcmp.lt.f32.partialorder %v396_v46, 1.0  ;;  %v398_v5 = vsub.f32 1.0, %v397_v0 }
 0x1fe   :  { %v554_v47 = vsel %vm402_vm13, 1.0, %v623_v32 }
 0x1ff   :  { %v405_v48 = vmul.f32 %v699_v30, %v554_v47  ;;  %v399_v13 = vmul.f32 %v398_v5, %v381_v39  ;;  %v420_v21 = vadd.f32 %v554_v47, %v401_v16 }
 0x201   :  { %v406_v49 = vadd.f32 %v405_v48, %v396_v46  ;;  %v400_v17 = vadd.f32 %v399_v13, %v397_v0  ;;  %v624_v46 = vmov 0  }
 0x202   :  { %566 = vset.pattern.permute.xlu0 %v624_v46  ;;  %567 = vset.pattern.permute.xlu1 %v624_v46 }
 0x203   :  { %vm407_vm14 = vcmp.gt.f32.partialorder %v406_v49, 0.99  ;;  %v411_v52 = vsub.f32 1.0, %v406_v49 }
 0x204   :  { %v555_v50 = vsel %vm407_vm14, 1.0, %v623_v32 }
 0x205   :  { %v410_v51 = vmul.f32 %v555_v50, %v554_v47 }
 0x207   :  { %v412_v53 = vmul.f32 %v411_v52, %v410_v51 }
 0x209   :  { %v413_v54 = vadd.f32 %v412_v53, %v394_v44 }
 0x20b   :  { %v414_v55 = vmul.f32 %v413_v54, %v410_v51 }
 0x20d   :  { %v415_v56 = vadd.f32 %v414_v55, %v406_v49  ;;  %v416_v7 = vadd.f32 %v414_v55, %v405_v48 }
 0x20f   :  { %vm421_vm15 = vcmp.lt.f32.partialorder %v415_v56, 1.0  ;;  %v417_v15 = vsub.f32 1.0, %v416_v7 }
 0x210   :  { %v556_v57 = vsel %vm421_vm15, 1.0, %v623_v32 }
 0x211   :  { %v424_v58 = vmul.f32 %v699_v30, %v556_v57  ;;  %v418_v24 = vmul.f32 %v417_v15, %v400_v17  ;;  %v439_v25 = vadd.f32 %v556_v57, %v420_v21 }
 0x213   :  { %v425_v59 = vadd.f32 %v424_v58, %v415_v56  ;;  %v419_v31 = vadd.f32 %v418_v24, %v416_v7 }
 0x215   :  { %vm426_vm4 = vcmp.gt.f32.partialorder %v425_v59, 0.99  ;;  %v430_v62 = vsub.f32 1.0, %v425_v59 }
 0x216   :  { %v557_v60 = vsel %vm426_vm4, 1.0, %v623_v32 }
 0x217   :  { %v429_v61 = vmul.f32 %v557_v60, %v556_v57 }
 0x219   :  { %v431_v63 = vmul.f32 %v430_v62, %v429_v61 }
 0x21b   :  { %v432_v3 = vadd.f32 %v431_v63, %v413_v54 }
 0x21d   :  { %v433_v4 = vmul.f32 %v432_v3, %v429_v61 }
 0x21f   :  { %v434_v6 = vadd.f32 %v433_v4, %v425_v59  ;;  %v435_v18 = vadd.f32 %v433_v4, %v424_v58 }
 0x221   :  { %vm440_vm5 = vcmp.lt.f32.partialorder %v434_v6, 1.0  ;;  %v436_v27 = vsub.f32 1.0, %v435_v18 }
 0x222   :  { %v558_v10 = vsel %vm440_vm5, 1.0, %v623_v32 }
 0x223   :  { %v443_v11 = vmul.f32 %v699_v30, %v558_v10  ;;  %v457_v29 = vadd.f32 %v558_v10, %v439_v25  ;;  %v437_v33 = vmul.f32 %v436_v27, %v419_v31 }
 0x225   :  { %v444_v14 = vadd.f32 %v443_v11, %v434_v6  ;;  %v438_v36 = vadd.f32 %v437_v33, %v435_v18 }
 0x227   :  { %vm445_vm6 = vcmp.gt.f32.partialorder %v444_v14, 0.99  ;;  %v449_v23 = vsub.f32 1.0, %v444_v14 }
 0x228   :  { %v559_v19 = vsel %vm445_vm6, 1.0, %v623_v32 }
 0x229   :  { %v448_v22 = vmul.f32 %v559_v19, %v558_v10 }
 0x22b   :  { %v450_v26 = vmul.f32 %v449_v23, %v448_v22 }
 0x22d   :  { %v451_v28 = vadd.f32 %v450_v26, %v432_v3 }
 0x22f   :  { %v466_v30 = vadd.f32 %v457_v29, %v451_v28  ;;  %v452_v34 = vmul.f32 %v451_v28, %v448_v22 }
 0x231   :  { %v467_v20 = vsel %vm39_vm1, %v466_v30, 0.0  ;;  %v453_v35 = vadd.f32 %v452_v34, %v443_v11  ;;  %v468_v44 = vsel %vm40_vm2, %v466_v30, 0.0 }
 0x232   :  { %v469_v32 = vsel %vm63_vm3, %v467_v20, 0.0  ;;  %v472_v45 = vsel %vm63_vm3, %v468_v44, 0.0 }
 0x233   :  { %470 = vadd.xlane.f32.xlu0 %v469_v32  ;;  %v454_v37 = vsub.f32 1.0, %v453_v35 }
 0x235   :  { %v455_v38 = vmul.f32 %v454_v37, %v438_v36 }
 0x237   :  { %v456_v39 = vadd.f32 %v455_v38, %v453_v35 }
 0x239   :  { %v458_v40 = vsel %vm39_vm1, %v456_v39, 0.0  ;;  %v459_v42 = vsel %vm40_vm2, %v456_v39, 0.0  ;;  %vm475_vm1 = vcmask 7168  }
 0x23a   :  { %v460_v41 = vsel %vm63_vm3, %v458_v40, 0.0  ;;  %v463_v43 = vsel %vm63_vm3, %v459_v42, 0.0 }
 0x23b   :  { %461 = vadd.xlane.f32.xlu1 %v460_v41 }
 0x23f   :  { %464 = vadd.xlane.f32.xlu1 %v463_v43 }
 0x243   :  { %473 = vadd.xlane.f32.xlu1 %v472_v45 }
 0x2c0   :  { %v471_v8 = vpop.xlane.xlu0 %470 }
 0x2c1   :  { %478 = vst.msk [vmem:[%s807_s4] sm:$0xff] %vm475_vm1, %v471_v8 }
 0x2c8   :  { %v462_v47 = vpop.xlane.xlu1 %461 }
 0x2c9   :  { %476 = vst.msk [vmem:[#allocation2] sm:$0xff] %vm475_vm1, %v462_v47 }
 0x2cc   :  { %v465_v48 = vpop.xlane.xlu1 %464 }
 0x2cd   :  { %477 = vst.msk [vmem:[#allocation2 + $0x8] sm:$0xff] %vm475_vm1, %v465_v48 }
 0x2d0   :  { %v474_v49 = vpop.xlane.xlu1 %473  ;;  %v480_v50 = vld [vmem:[#allocation2] sm:$0xff] }
 0x2d1   :  { %479 = vst.msk [vmem:[%s807_s4 + $0x8] sm:$0xff] %vm475_vm1, %v474_v49  ;;  %486 = vperm.xlu0 %566, %v480_v50  }
 0x2d4   :  { %v481_v9 = vld [vmem:[#allocation2 + $0x8] sm:$0xff] }
 0x2d5   :  { %491 = vperm.xlu1 %567, %v481_v9  }
 0x350   :  { %v487_v12 = vpop.permute.xlu0 %486 }
 0x351   :  { %v494_v51 = vmul.f32 %v487_v12, %v669_v1 }
 0x353   :  { %496 = vst.msk [vmem:[#allocation7] sm:$0xff] %vm51_vm0, %v494_v51 }
 0x354   :  { %v492_v52 = vpop.permute.xlu1 %491 }
 0x355   :  { %v495_v53 = vmul.f32 %v492_v52, %v671_v2 }
 0x357   :  { %497 = vst.msk [vmem:[#allocation7 + $0x8] sm:$0xff] %vm51_vm0, %v495_v53 }
 0x358   :  { %605 = shalt.err (!%p602_p12)
}
 0x359   :  { %s606_s12 = scalar_lea.hbm %s806_s3, 256 }
 0x35a   :  { %p607_p13 = scmp.ne.s32.totalorder %s806_s3, %s606_s12  ;;  %p610_p0 = scmp.lt.u32.totalorder %s606_s12, %s806_s3 }
 0x35c   :  { %p612_p1 = pnand %p610_p0, %p607_p13 }
 0x35e   :  { %615 = shalt.err (!%p612_p1)
}
 0x35f   :  { %509 = dma.vmem_to_hbm [thread:$0]  %s504_s9, 256, %s806_s3, [#allocation6], %s621_s25, %s621_s25, %s622_s26  }
 0x360   :  { %618 = dma.done.wait [#allocation6], 256  }
 0x361   :  { %619 = vsyncadd [#allocation6], 4294967040 }
 0x362   :  { %517 = vsyncpa [#allocation5], 1 }
 0x363   :  { %518 = vsyncpa [#allocation6], 1 }

</bundles_post_ra>
